<compile_context>
chip_gen: v7x
topology: tpu7x:2x2x1
jax: 0.10.0
libtpu: 0.0.40
codegen_flags: <defaults>
</compile_context>

<pallas_src>
import functools

import jax
import jax.numpy as jnp
from jax.experimental import pallas as pl
from jax.experimental.pallas import tpu as pltpu


def _round_up(x: int, m: int) -> int:
    return (x + m - 1) // m * m


# -----------------------------------------------------------------------------
# Pallas kernel: fused (s1+s2) GRU recurrence + split-weight head + softmax
# -----------------------------------------------------------------------------
def _gru_pair_kernel(
    emb_ref,      # (T*B2p, H) f32, time-major rows: row index = t*B2p + b
    len_ref,      # (B2p, 1)   i32  (0 for padded rows)
    w_ir_ref,     # (H, H) f32  (pre-transposed: x @ W)
    w_iz_ref,     # (H, H)
    w_in_ref,     # (H, H)
    w_hr_ref,     # (H, H) f32  (pre-transposed: h @ W)
    w_hz_ref,     # (H, H)
    w_hn_ref,     # (H, H)
    b_r_ref,      # (1, H) f32  = b_ih_r + b_hh_r   (folded)
    b_z_ref,      # (1, H) f32  = b_ih_z + b_hh_z   (folded)
    b_in_ref,     # (1, H) f32  = b_ih_n            (folded into GI_n)
    b_hn_ref,     # (1, H) f32  = b_hh_n            (stays inside the r* term)
    w_lin1_ref,   # (H, C) f32  classifier weight for the s1 half
    w_lin2_ref,   # (H, C) f32  classifier weight for the s2 half
    b_lin_ref,    # (1, C) f32
    out_ref,      # (B, C) f32
    *,
    batch_size: int,
):
    B = batch_size
    B2p = len_ref.shape[0]                 # padded fused batch (multiple of 8)
    T = emb_ref.shape[0] // B2p

    lens = len_ref[...]                    # (B2p, 1) int32

    # ---- input-path gate projections: one large matmul per gate, all timesteps
    # (off the serial critical path, fills the MXU with a tall operand)
    xf = emb_ref[...]                      # (T*B2p, H)
    gi_r = jnp.dot(xf, w_ir_ref[...], preferred_element_type=jnp.float32) + b_r_ref[...]
    gi_z = jnp.dot(xf, w_iz_ref[...], preferred_element_type=jnp.float32) + b_z_ref[...]
    gi_n = jnp.dot(xf, w_in_ref[...], preferred_element_type=jnp.float32) + b_in_ref[...]

    # ---- hoist recurrent weights / bias out of the loop
    w_hr = w_hr_ref[...]
    w_hz = w_hz_ref[...]
    w_hn = w_hn_ref[...]
    b_hn = b_hn_ref[...]

    # ---- serial recurrence over time, fully unrolled (T is small & static).
    # Row slices are sublane-tile aligned because B2p is a multiple of 8.
    h = jnp.zeros((B2p, H := emb_ref.shape[1]), dtype=jnp.float32)
    for t in range(T):
        rows = slice(t * B2p, (t + 1) * B2p)               # static, tile-aligned
        gh_r = jnp.dot(h, w_hr, preferred_element_type=jnp.float32)
        gh_z = jnp.dot(h, w_hz, preferred_element_type=jnp.float32)
        gh_n = jnp.dot(h, w_hn, preferred_element_type=jnp.float32) + b_hn
        r = jax.nn.sigmoid(gi_r[rows] + gh_r)
        z = jax.nn.sigmoid(gi_z[rows] + gh_z)
        n = jnp.tanh(gi_n[rows] + r * gh_n)
        h_new = (1.0 - z) * n + z * h
        # packed-sequence semantics: freeze h once t >= length (padded rows
        # have length 0 and therefore stay at zero)
        h = jnp.where(lens > t, h_new, h)

    # ---- head: split-weight linear (avoids a lane-axis concat) -> softmax
    h1 = h[:B]                                              # (B, H)
    h2 = h[B:2 * B]                                         # (B, H)
    logits = (
        jnp.dot(h1, w_lin1_ref[...], preferred_element_type=jnp.float32)
        + jnp.dot(h2, w_lin2_ref[...], preferred_element_type=jnp.float32)
        + b_lin_ref[...]
    )                                                       # (B, C)

    m = jnp.max(logits, axis=-1, keepdims=True)
    e = jnp.exp(logits - m)
    out_ref[...] = e / jnp.sum(e, axis=-1, keepdims=True)


# -----------------------------------------------------------------------------
# Wrapper: layout plumbing (time-major gather, padded fused batch,
#          per-gate transposed weights, per-sentence split classifier weight)
# -----------------------------------------------------------------------------
def rnn_pair_forward(params, s1_ids, s2_ids, s1_lengths, s2_lengths):
    """ids: (B, T) int32, lengths: (B,) int32 -> probs (B, C) f32."""
    B, T = s1_ids.shape
    H = params["w_hh"].shape[1]
    C = params["w_lin"].shape[0]
    B2 = 2 * B
    B2p = _round_up(B2, 8)          # sublane-aligned fused batch

    emb_table = params["embedding"]                         # (V, H), row 0 zeros

    # Fuse the two sentences into one batch, pad to a sublane multiple, and
    # gather TIME-MAJOR directly (no materialize-then-transpose round trip).
    ids = jnp.concatenate([s1_ids, s2_ids], axis=0)         # (2B, T)
    ids = jnp.pad(ids, ((0, B2p - B2), (0, 0)))             # padded rows -> id 0
    emb_flat = emb_table[ids.T].astype(jnp.float32).reshape(T * B2p, H)
    lens = jnp.pad(
        jnp.concatenate([s1_lengths, s2_lengths], axis=0).astype(jnp.int32),
        (0, B2p - B2),
    ).reshape(B2p, 1)                                       # padded rows -> len 0

    # Pre-transpose + split fused GRU weights per gate; pre-fold biases.
    w_ih = params["w_ih"]                                   # (3H, H) PyTorch layout
    w_hh = params["w_hh"]                                   # (3H, H)
    b_ih = params["b_ih"]                                   # (3H,)
    b_hh = params["b_hh"]                                   # (3H,)

    w_ir_t = w_ih[0 * H:1 * H].T                            # (H, H)
    w_iz_t = w_ih[1 * H:2 * H].T
    w_in_t = w_ih[2 * H:3 * H].T
    w_hr_t = w_hh[0 * H:1 * H].T
    w_hz_t = w_hh[1 * H:2 * H].T
    w_hn_t = w_hh[2 * H:3 * H].T

    b_r = (b_ih[0 * H:1 * H] + b_hh[0 * H:1 * H]).reshape(1, H)
    b_z = (b_ih[1 * H:2 * H] + b_hh[1 * H:2 * H]).reshape(1, H)
    b_in = b_ih[2 * H:3 * H].reshape(1, H)
    b_hn = b_hh[2 * H:3 * H].reshape(1, H)

    # Split the classifier weight per sentence half so the kernel never
    # concatenates along the lane axis.
    w_lin = params["w_lin"]                                 # (C, 2H)
    w_lin1 = w_lin[:, :H].T                                 # (H, C)
    w_lin2 = w_lin[:, H:].T                                 # (H, C)
    b_lin = params["b_lin"].reshape(1, C)

    vmem = pl.BlockSpec(memory_space=pltpu.MemorySpace.VMEM)
    kernel = functools.partial(_gru_pair_kernel, batch_size=B)

    probs = pl.pallas_call(
        kernel,
        out_shape=jax.ShapeDtypeStruct((B, C), jnp.float32),
        in_specs=[vmem] * 15,
        out_specs=vmem,
        compiler_params=pltpu.CompilerParams(
            vmem_limit_bytes=32 * 1024 * 1024,
        ),
    )(
        emb_flat, lens,
        w_ir_t, w_iz_t, w_in_t,
        w_hr_t, w_hz_t, w_hn_t,
        b_r, b_z, b_in, b_hn,
        w_lin1, w_lin2, b_lin,
    )
    return probs


# -----------------------------------------------------------------------------
# Pure-JAX reference (correctness check, mirrors PyTorch GRU gate math)
# -----------------------------------------------------------------------------
def reference_forward(params, s1_ids, s2_ids, s1_lengths, s2_lengths):
    H = params["w_hh"].shape[1]
    emb_table = params["embedding"]

    def run_gru(ids, lengths):
        x_seq = emb_table[ids].astype(jnp.float32)          # (B, T, H)
        B, T, _ = x_seq.shape
        h = jnp.zeros((B, H), jnp.float32)
        for t in range(T):
            x = x_seq[:, t, :]
            gi = x @ params["w_ih"].T + params["b_ih"]
            gh = h @ params["w_hh"].T + params["b_hh"]
            r = jax.nn.sigmoid(gi[:, :H] + gh[:, :H])
            z = jax.nn.sigmoid(gi[:, H:2 * H] + gh[:, H:2 * H])
            n = jnp.tanh(gi[:, 2 * H:] + r * gh[:, 2 * H:])
            h_new = (1.0 - z) * n + z * h
            mask = (lengths > t)[:, None]
            h = jnp.where(mask, h_new, h)
        return h

    h1 = run_gru(s1_ids, s1_lengths)
    h2 = run_gru(s2_ids, s2_lengths)
    hidden = jnp.concatenate([h1, h2], axis=-1)
    logits_pre = hidden @ params["w_lin"].T + params["b_lin"]
    return jax.nn.softmax(logits_pre, axis=-1)


# -----------------------------------------------------------------------------
# Deterministic parameter init (matches the module's __init__ shapes)
# -----------------------------------------------------------------------------
def init_params(key, vocab_size, hidden_size, num_classes):
    H = hidden_size
    k = 1.0 / jnp.sqrt(jnp.float32(H))
    keys = jax.random.split(key, 7)
    embedding = jax.random.normal(keys[0], (vocab_size, H), jnp.float32) * 0.1
    embedding = embedding.at[0].set(0.0)  # padding_idx=0
    w_ih = jax.random.uniform(keys[1], (3 * H, H), jnp.float32, -k, k)
    w_hh = jax.random.uniform(keys[2], (3 * H, H), jnp.float32, -k, k)
    b_ih = jax.random.uniform(keys[3], (3 * H,), jnp.float32, -k, k)
    b_hh = jax.random.uniform(keys[4], (3 * H,), jnp.float32, -k, k)
    kl = 1.0 / jnp.sqrt(jnp.float32(2 * H))
    w_lin = jax.random.uniform(keys[5], (num_classes, 2 * H), jnp.float32, -kl, kl)
    b_lin = jax.random.uniform(keys[6], (num_classes,), jnp.float32, -kl, kl)
    return dict(
        embedding=embedding, w_ih=w_ih, w_hh=w_hh, b_ih=b_ih, b_hh=b_hh,
        w_lin=w_lin, b_lin=b_lin,
    )


if __name__ == "__main__":
    VOCAB, H, C = 50, 32, 2
    B, T = 2, 8

    key = jax.random.PRNGKey(0)
    pkey, k1, k2, k3, k4 = jax.random.split(key, 5)
    params = init_params(pkey, VOCAB, H, C)

    s1_lengths = jnp.array([8, 5], dtype=jnp.int32)
    s2_lengths = jnp.array([3, 7], dtype=jnp.int32)

    def make_ids(k, lengths):
        ids = jax.random.randint(k, (B, T), 1, VOCAB, dtype=jnp.int32)
        t_idx = jnp.arange(T)[None, :]
        return jnp.where(t_idx < lengths[:, None], ids, 0)  # pad with id 0

    s1_ids = make_ids(k1, s1_lengths)
    s2_ids = make_ids(k2, s2_lengths)

    probs = rnn_pair_forward(params, s1_ids, s2_ids, s1_lengths, s2_lengths)
    probs = jax.block_until_ready(probs)

    ref = reference_forward(params, s1_ids, s2_ids, s1_lengths, s2_lengths)
    assert probs.shape == (B, C)
    assert jnp.allclose(probs, ref, rtol=1e-4, atol=1e-4), (probs, ref)

    print("KERNEL_OK")
</pallas_src>

<mosaic_0001>
module attributes {stable_mosaic.version = 11 : i64} {
  func.func @_gru_pair_kernel(%arg0: memref<64x32xf32, #tpu.memory_space<vmem>>, %arg1: memref<8x1xi32, #tpu.memory_space<vmem>>, %arg2: memref<32x32xf32, #tpu.memory_space<vmem>>, %arg3: memref<32x32xf32, #tpu.memory_space<vmem>>, %arg4: memref<32x32xf32, #tpu.memory_space<vmem>>, %arg5: memref<32x32xf32, #tpu.memory_space<vmem>>, %arg6: memref<32x32xf32, #tpu.memory_space<vmem>>, %arg7: memref<32x32xf32, #tpu.memory_space<vmem>>, %arg8: memref<1x32xf32, #tpu.memory_space<vmem>>, %arg9: memref<1x32xf32, #tpu.memory_space<vmem>>, %arg10: memref<1x32xf32, #tpu.memory_space<vmem>>, %arg11: memref<1x32xf32, #tpu.memory_space<vmem>>, %arg12: memref<32x2xf32, #tpu.memory_space<vmem>>, %arg13: memref<32x2xf32, #tpu.memory_space<vmem>>, %arg14: memref<1x2xf32, #tpu.memory_space<vmem>>, %arg15: memref<2x2xf32, #tpu.memory_space<vmem>>) attributes {dimension_semantics = [], scalar_prefetch = 0 : i64, scratch_operands = 0 : i64, tpu.core_type = #tpu.core_type<tc>} {
    %c0 = arith.constant 0 : index
    %c0_0 = arith.constant 0 : index
    %0 = vector.load %arg1[%c0, %c0_0] : memref<8x1xi32, #tpu.memory_space<vmem>>, vector<8x1xi32>
    %c0_1 = arith.constant 0 : index
    %c0_2 = arith.constant 0 : index
    %1 = vector.load %arg0[%c0_1, %c0_2] : memref<64x32xf32, #tpu.memory_space<vmem>>, vector<64x32xf32>
    %c0_3 = arith.constant 0 : index
    %c0_4 = arith.constant 0 : index
    %2 = vector.load %arg2[%c0_3, %c0_4] : memref<32x32xf32, #tpu.memory_space<vmem>>, vector<32x32xf32>
    %cst = arith.constant dense<0.000000e+00> : vector<64x32xf32>
    %3 = tpu.matmul %1, %2, %cst {dimension_numbers = #tpu.dot_dimension_numbers<[1], [0], [0], [1], [0, 0, 1, 1], [], []>} : vector<64x32xf32>, vector<32x32xf32>, vector<64x32xf32> -> vector<64x32xf32>
    %c0_5 = arith.constant 0 : index
    %c0_6 = arith.constant 0 : index
    %4 = vector.load %arg8[%c0_5, %c0_6] : memref<1x32xf32, #tpu.memory_space<vmem>>, vector<1x32xf32>
    %5 = vector.broadcast %4 : vector<1x32xf32> to vector<64x32xf32>
    %6 = arith.addf %3, %5 : vector<64x32xf32>
    %c0_7 = arith.constant 0 : index
    %c0_8 = arith.constant 0 : index
    %7 = vector.load %arg3[%c0_7, %c0_8] : memref<32x32xf32, #tpu.memory_space<vmem>>, vector<32x32xf32>
    %cst_9 = arith.constant dense<0.000000e+00> : vector<64x32xf32>
    %8 = tpu.matmul %1, %7, %cst_9 {dimension_numbers = #tpu.dot_dimension_numbers<[1], [0], [0], [1], [0, 0, 1, 1], [], []>} : vector<64x32xf32>, vector<32x32xf32>, vector<64x32xf32> -> vector<64x32xf32>
    %c0_10 = arith.constant 0 : index
    %c0_11 = arith.constant 0 : index
    %9 = vector.load %arg9[%c0_10, %c0_11] : memref<1x32xf32, #tpu.memory_space<vmem>>, vector<1x32xf32>
    %10 = vector.broadcast %9 : vector<1x32xf32> to vector<64x32xf32>
    %11 = arith.addf %8, %10 : vector<64x32xf32>
    %c0_12 = arith.constant 0 : index
    %c0_13 = arith.constant 0 : index
    %12 = vector.load %arg4[%c0_12, %c0_13] : memref<32x32xf32, #tpu.memory_space<vmem>>, vector<32x32xf32>
    %cst_14 = arith.constant dense<0.000000e+00> : vector<64x32xf32>
    %13 = tpu.matmul %1, %12, %cst_14 {dimension_numbers = #tpu.dot_dimension_numbers<[1], [0], [0], [1], [0, 0, 1, 1], [], []>} : vector<64x32xf32>, vector<32x32xf32>, vector<64x32xf32> -> vector<64x32xf32>
    %c0_15 = arith.constant 0 : index
    %c0_16 = arith.constant 0 : index
    %14 = vector.load %arg10[%c0_15, %c0_16] : memref<1x32xf32, #tpu.memory_space<vmem>>, vector<1x32xf32>
    %15 = vector.broadcast %14 : vector<1x32xf32> to vector<64x32xf32>
    %16 = arith.addf %13, %15 : vector<64x32xf32>
    %c0_17 = arith.constant 0 : index
    %c0_18 = arith.constant 0 : index
    %17 = vector.load %arg5[%c0_17, %c0_18] : memref<32x32xf32, #tpu.memory_space<vmem>>, vector<32x32xf32>
    %c0_19 = arith.constant 0 : index
    %c0_20 = arith.constant 0 : index
    %18 = vector.load %arg6[%c0_19, %c0_20] : memref<32x32xf32, #tpu.memory_space<vmem>>, vector<32x32xf32>
    %c0_21 = arith.constant 0 : index
    %c0_22 = arith.constant 0 : index
    %19 = vector.load %arg7[%c0_21, %c0_22] : memref<32x32xf32, #tpu.memory_space<vmem>>, vector<32x32xf32>
    %c0_23 = arith.constant 0 : index
    %c0_24 = arith.constant 0 : index
    %20 = vector.load %arg11[%c0_23, %c0_24] : memref<1x32xf32, #tpu.memory_space<vmem>>, vector<1x32xf32>
    %cst_25 = arith.constant 0.000000e+00 : f32
    %21 = vector.broadcast %cst_25 : f32 to vector<8x32xf32>
    %cst_26 = arith.constant dense<0.000000e+00> : vector<8x32xf32>
    %22 = tpu.matmul %21, %17, %cst_26 {dimension_numbers = #tpu.dot_dimension_numbers<[1], [0], [0], [1], [0, 0, 1, 1], [], []>} : vector<8x32xf32>, vector<32x32xf32>, vector<8x32xf32> -> vector<8x32xf32>
    %cst_27 = arith.constant dense<0.000000e+00> : vector<8x32xf32>
    %23 = tpu.matmul %21, %18, %cst_27 {dimension_numbers = #tpu.dot_dimension_numbers<[1], [0], [0], [1], [0, 0, 1, 1], [], []>} : vector<8x32xf32>, vector<32x32xf32>, vector<8x32xf32> -> vector<8x32xf32>
    %cst_28 = arith.constant dense<0.000000e+00> : vector<8x32xf32>
    %24 = tpu.matmul %21, %19, %cst_28 {dimension_numbers = #tpu.dot_dimension_numbers<[1], [0], [0], [1], [0, 0, 1, 1], [], []>} : vector<8x32xf32>, vector<32x32xf32>, vector<8x32xf32> -> vector<8x32xf32>
    %25 = vector.broadcast %20 : vector<1x32xf32> to vector<8x32xf32>
    %26 = arith.addf %24, %25 : vector<8x32xf32>
    %27 = vector.extract_strided_slice %6 {offsets = [0, 0], sizes = [8, 32], strides = [1, 1]} : vector<64x32xf32> to vector<8x32xf32>
    %28 = arith.addf %27, %22 : vector<8x32xf32>
    %29 = arith.negf %28 : vector<8x32xf32>
    %30 = math.exp %29 : vector<8x32xf32>
    %cst_29 = arith.constant 1.000000e+00 : f32
    %31 = vector.broadcast %cst_29 : f32 to vector<8x32xf32>
    %32 = arith.addf %31, %30 : vector<8x32xf32>
    %33 = arith.divf %31, %32 : vector<8x32xf32>
    %34 = vector.extract_strided_slice %11 {offsets = [0, 0], sizes = [8, 32], strides = [1, 1]} : vector<64x32xf32> to vector<8x32xf32>
    %35 = arith.addf %34, %23 : vector<8x32xf32>
    %36 = arith.negf %35 : vector<8x32xf32>
    %37 = math.exp %36 : vector<8x32xf32>
    %cst_30 = arith.constant 1.000000e+00 : f32
    %38 = vector.broadcast %cst_30 : f32 to vector<8x32xf32>
    %39 = arith.addf %38, %37 : vector<8x32xf32>
    %40 = arith.divf %38, %39 : vector<8x32xf32>
    %41 = vector.extract_strided_slice %16 {offsets = [0, 0], sizes = [8, 32], strides = [1, 1]} : vector<64x32xf32> to vector<8x32xf32>
    %42 = arith.mulf %33, %26 : vector<8x32xf32>
    %43 = arith.addf %41, %42 : vector<8x32xf32>
    %44 = math.tanh %43 : vector<8x32xf32>
    %cst_31 = arith.constant 1.000000e+00 : f32
    %45 = vector.broadcast %cst_31 : f32 to vector<8x32xf32>
    %46 = arith.subf %45, %40 : vector<8x32xf32>
    %47 = arith.mulf %46, %44 : vector<8x32xf32>
    %48 = arith.mulf %40, %21 : vector<8x32xf32>
    %49 = arith.addf %47, %48 : vector<8x32xf32>
    %c0_i32 = arith.constant 0 : i32
    %50 = vector.broadcast %c0_i32 : i32 to vector<8x1xi32>
    %51 = arith.cmpi sgt, %0, %50 : vector<8x1xi32>
    %52 = vector.shape_cast %51 : vector<8x1xi1> to vector<8x1xi1>
    %53 = vector.broadcast %52 : vector<8x1xi1> to vector<8x32xi1>
    %54 = arith.select %53, %49, %21 : vector<8x32xi1>, vector<8x32xf32>
    %cst_32 = arith.constant dense<0.000000e+00> : vector<8x32xf32>
    %55 = tpu.matmul %54, %17, %cst_32 {dimension_numbers = #tpu.dot_dimension_numbers<[1], [0], [0], [1], [0, 0, 1, 1], [], []>} : vector<8x32xf32>, vector<32x32xf32>, vector<8x32xf32> -> vector<8x32xf32>
    %cst_33 = arith.constant dense<0.000000e+00> : vector<8x32xf32>
    %56 = tpu.matmul %54, %18, %cst_33 {dimension_numbers = #tpu.dot_dimension_numbers<[1], [0], [0], [1], [0, 0, 1, 1], [], []>} : vector<8x32xf32>, vector<32x32xf32>, vector<8x32xf32> -> vector<8x32xf32>
    %cst_34 = arith.constant dense<0.000000e+00> : vector<8x32xf32>
    %57 = tpu.matmul %54, %19, %cst_34 {dimension_numbers = #tpu.dot_dimension_numbers<[1], [0], [0], [1], [0, 0, 1, 1], [], []>} : vector<8x32xf32>, vector<32x32xf32>, vector<8x32xf32> -> vector<8x32xf32>
    %58 = vector.broadcast %20 : vector<1x32xf32> to vector<8x32xf32>
    %59 = arith.addf %57, %58 : vector<8x32xf32>
    %60 = vector.extract_strided_slice %6 {offsets = [8, 0], sizes = [8, 32], strides = [1, 1]} : vector<64x32xf32> to vector<8x32xf32>
    %61 = arith.addf %60, %55 : vector<8x32xf32>
    %62 = arith.negf %61 : vector<8x32xf32>
    %63 = math.exp %62 : vector<8x32xf32>
    %cst_35 = arith.constant 1.000000e+00 : f32
    %64 = vector.broadcast %cst_35 : f32 to vector<8x32xf32>
    %65 = arith.addf %64, %63 : vector<8x32xf32>
    %66 = arith.divf %64, %65 : vector<8x32xf32>
    %67 = vector.extract_strided_slice %11 {offsets = [8, 0], sizes = [8, 32], strides = [1, 1]} : vector<64x32xf32> to vector<8x32xf32>
    %68 = arith.addf %67, %56 : vector<8x32xf32>
    %69 = arith.negf %68 : vector<8x32xf32>
    %70 = math.exp %69 : vector<8x32xf32>
    %cst_36 = arith.constant 1.000000e+00 : f32
    %71 = vector.broadcast %cst_36 : f32 to vector<8x32xf32>
    %72 = arith.addf %71, %70 : vector<8x32xf32>
    %73 = arith.divf %71, %72 : vector<8x32xf32>
    %74 = vector.extract_strided_slice %16 {offsets = [8, 0], sizes = [8, 32], strides = [1, 1]} : vector<64x32xf32> to vector<8x32xf32>
    %75 = arith.mulf %66, %59 : vector<8x32xf32>
    %76 = arith.addf %74, %75 : vector<8x32xf32>
    %77 = math.tanh %76 : vector<8x32xf32>
    %cst_37 = arith.constant 1.000000e+00 : f32
    %78 = vector.broadcast %cst_37 : f32 to vector<8x32xf32>
    %79 = arith.subf %78, %73 : vector<8x32xf32>
    %80 = arith.mulf %79, %77 : vector<8x32xf32>
    %81 = arith.mulf %73, %54 : vector<8x32xf32>
    %82 = arith.addf %80, %81 : vector<8x32xf32>
    %c1_i32 = arith.constant 1 : i32
    %83 = vector.broadcast %c1_i32 : i32 to vector<8x1xi32>
    %84 = arith.cmpi sgt, %0, %83 : vector<8x1xi32>
    %85 = vector.shape_cast %84 : vector<8x1xi1> to vector<8x1xi1>
    %86 = vector.broadcast %85 : vector<8x1xi1> to vector<8x32xi1>
    %87 = arith.select %86, %82, %54 : vector<8x32xi1>, vector<8x32xf32>
    %cst_38 = arith.constant dense<0.000000e+00> : vector<8x32xf32>
    %88 = tpu.matmul %87, %17, %cst_38 {dimension_numbers = #tpu.dot_dimension_numbers<[1], [0], [0], [1], [0, 0, 1, 1], [], []>} : vector<8x32xf32>, vector<32x32xf32>, vector<8x32xf32> -> vector<8x32xf32>
    %cst_39 = arith.constant dense<0.000000e+00> : vector<8x32xf32>
    %89 = tpu.matmul %87, %18, %cst_39 {dimension_numbers = #tpu.dot_dimension_numbers<[1], [0], [0], [1], [0, 0, 1, 1], [], []>} : vector<8x32xf32>, vector<32x32xf32>, vector<8x32xf32> -> vector<8x32xf32>
    %cst_40 = arith.constant dense<0.000000e+00> : vector<8x32xf32>
    %90 = tpu.matmul %87, %19, %cst_40 {dimension_numbers = #tpu.dot_dimension_numbers<[1], [0], [0], [1], [0, 0, 1, 1], [], []>} : vector<8x32xf32>, vector<32x32xf32>, vector<8x32xf32> -> vector<8x32xf32>
    %91 = vector.broadcast %20 : vector<1x32xf32> to vector<8x32xf32>
    %92 = arith.addf %90, %91 : vector<8x32xf32>
    %93 = vector.extract_strided_slice %6 {offsets = [16, 0], sizes = [8, 32], strides = [1, 1]} : vector<64x32xf32> to vector<8x32xf32>
    %94 = arith.addf %93, %88 : vector<8x32xf32>
    %95 = arith.negf %94 : vector<8x32xf32>
    %96 = math.exp %95 : vector<8x32xf32>
    %cst_41 = arith.constant 1.000000e+00 : f32
    %97 = vector.broadcast %cst_41 : f32 to vector<8x32xf32>
    %98 = arith.addf %97, %96 : vector<8x32xf32>
    %99 = arith.divf %97, %98 : vector<8x32xf32>
    %100 = vector.extract_strided_slice %11 {offsets = [16, 0], sizes = [8, 32], strides = [1, 1]} : vector<64x32xf32> to vector<8x32xf32>
    %101 = arith.addf %100, %89 : vector<8x32xf32>
    %102 = arith.negf %101 : vector<8x32xf32>
    %103 = math.exp %102 : vector<8x32xf32>
    %cst_42 = arith.constant 1.000000e+00 : f32
    %104 = vector.broadcast %cst_42 : f32 to vector<8x32xf32>
    %105 = arith.addf %104, %103 : vector<8x32xf32>
    %106 = arith.divf %104, %105 : vector<8x32xf32>
    %107 = vector.extract_strided_slice %16 {offsets = [16, 0], sizes = [8, 32], strides = [1, 1]} : vector<64x32xf32> to vector<8x32xf32>
    %108 = arith.mulf %99, %92 : vector<8x32xf32>
    %109 = arith.addf %107, %108 : vector<8x32xf32>
    %110 = math.tanh %109 : vector<8x32xf32>
    %cst_43 = arith.constant 1.000000e+00 : f32
    %111 = vector.broadcast %cst_43 : f32 to vector<8x32xf32>
    %112 = arith.subf %111, %106 : vector<8x32xf32>
    %113 = arith.mulf %112, %110 : vector<8x32xf32>
    %114 = arith.mulf %106, %87 : vector<8x32xf32>
    %115 = arith.addf %113, %114 : vector<8x32xf32>
    %c2_i32 = arith.constant 2 : i32
    %116 = vector.broadcast %c2_i32 : i32 to vector<8x1xi32>
    %117 = arith.cmpi sgt, %0, %116 : vector<8x1xi32>
    %118 = vector.shape_cast %117 : vector<8x1xi1> to vector<8x1xi1>
    %119 = vector.broadcast %118 : vector<8x1xi1> to vector<8x32xi1>
    %120 = arith.select %119, %115, %87 : vector<8x32xi1>, vector<8x32xf32>
    %cst_44 = arith.constant dense<0.000000e+00> : vector<8x32xf32>
    %121 = tpu.matmul %120, %17, %cst_44 {dimension_numbers = #tpu.dot_dimension_numbers<[1], [0], [0], [1], [0, 0, 1, 1], [], []>} : vector<8x32xf32>, vector<32x32xf32>, vector<8x32xf32> -> vector<8x32xf32>
    %cst_45 = arith.constant dense<0.000000e+00> : vector<8x32xf32>
    %122 = tpu.matmul %120, %18, %cst_45 {dimension_numbers = #tpu.dot_dimension_numbers<[1], [0], [0], [1], [0, 0, 1, 1], [], []>} : vector<8x32xf32>, vector<32x32xf32>, vector<8x32xf32> -> vector<8x32xf32>
    %cst_46 = arith.constant dense<0.000000e+00> : vector<8x32xf32>
    %123 = tpu.matmul %120, %19, %cst_46 {dimension_numbers = #tpu.dot_dimension_numbers<[1], [0], [0], [1], [0, 0, 1, 1], [], []>} : vector<8x32xf32>, vector<32x32xf32>, vector<8x32xf32> -> vector<8x32xf32>
    %124 = vector.broadcast %20 : vector<1x32xf32> to vector<8x32xf32>
    %125 = arith.addf %123, %124 : vector<8x32xf32>
    %126 = vector.extract_strided_slice %6 {offsets = [24, 0], sizes = [8, 32], strides = [1, 1]} : vector<64x32xf32> to vector<8x32xf32>
    %127 = arith.addf %126, %121 : vector<8x32xf32>
    %128 = arith.negf %127 : vector<8x32xf32>
    %129 = math.exp %128 : vector<8x32xf32>
    %cst_47 = arith.constant 1.000000e+00 : f32
    %130 = vector.broadcast %cst_47 : f32 to vector<8x32xf32>
    %131 = arith.addf %130, %129 : vector<8x32xf32>
    %132 = arith.divf %130, %131 : vector<8x32xf32>
    %133 = vector.extract_strided_slice %11 {offsets = [24, 0], sizes = [8, 32], strides = [1, 1]} : vector<64x32xf32> to vector<8x32xf32>
    %134 = arith.addf %133, %122 : vector<8x32xf32>
    %135 = arith.negf %134 : vector<8x32xf32>
    %136 = math.exp %135 : vector<8x32xf32>
    %cst_48 = arith.constant 1.000000e+00 : f32
    %137 = vector.broadcast %cst_48 : f32 to vector<8x32xf32>
    %138 = arith.addf %137, %136 : vector<8x32xf32>
    %139 = arith.divf %137, %138 : vector<8x32xf32>
    %140 = vector.extract_strided_slice %16 {offsets = [24, 0], sizes = [8, 32], strides = [1, 1]} : vector<64x32xf32> to vector<8x32xf32>
    %141 = arith.mulf %132, %125 : vector<8x32xf32>
    %142 = arith.addf %140, %141 : vector<8x32xf32>
    %143 = math.tanh %142 : vector<8x32xf32>
    %cst_49 = arith.constant 1.000000e+00 : f32
    %144 = vector.broadcast %cst_49 : f32 to vector<8x32xf32>
    %145 = arith.subf %144, %139 : vector<8x32xf32>
    %146 = arith.mulf %145, %143 : vector<8x32xf32>
    %147 = arith.mulf %139, %120 : vector<8x32xf32>
    %148 = arith.addf %146, %147 : vector<8x32xf32>
    %c3_i32 = arith.constant 3 : i32
    %149 = vector.broadcast %c3_i32 : i32 to vector<8x1xi32>
    %150 = arith.cmpi sgt, %0, %149 : vector<8x1xi32>
    %151 = vector.shape_cast %150 : vector<8x1xi1> to vector<8x1xi1>
    %152 = vector.broadcast %151 : vector<8x1xi1> to vector<8x32xi1>
    %153 = arith.select %152, %148, %120 : vector<8x32xi1>, vector<8x32xf32>
    %cst_50 = arith.constant dense<0.000000e+00> : vector<8x32xf32>
    %154 = tpu.matmul %153, %17, %cst_50 {dimension_numbers = #tpu.dot_dimension_numbers<[1], [0], [0], [1], [0, 0, 1, 1], [], []>} : vector<8x32xf32>, vector<32x32xf32>, vector<8x32xf32> -> vector<8x32xf32>
    %cst_51 = arith.constant dense<0.000000e+00> : vector<8x32xf32>
    %155 = tpu.matmul %153, %18, %cst_51 {dimension_numbers = #tpu.dot_dimension_numbers<[1], [0], [0], [1], [0, 0, 1, 1], [], []>} : vector<8x32xf32>, vector<32x32xf32>, vector<8x32xf32> -> vector<8x32xf32>
    %cst_52 = arith.constant dense<0.000000e+00> : vector<8x32xf32>
    %156 = tpu.matmul %153, %19, %cst_52 {dimension_numbers = #tpu.dot_dimension_numbers<[1], [0], [0], [1], [0, 0, 1, 1], [], []>} : vector<8x32xf32>, vector<32x32xf32>, vector<8x32xf32> -> vector<8x32xf32>
    %157 = vector.broadcast %20 : vector<1x32xf32> to vector<8x32xf32>
    %158 = arith.addf %156, %157 : vector<8x32xf32>
    %159 = vector.extract_strided_slice %6 {offsets = [32, 0], sizes = [8, 32], strides = [1, 1]} : vector<64x32xf32> to vector<8x32xf32>
    %160 = arith.addf %159, %154 : vector<8x32xf32>
    %161 = arith.negf %160 : vector<8x32xf32>
    %162 = math.exp %161 : vector<8x32xf32>
    %cst_53 = arith.constant 1.000000e+00 : f32
    %163 = vector.broadcast %cst_53 : f32 to vector<8x32xf32>
    %164 = arith.addf %163, %162 : vector<8x32xf32>
    %165 = arith.divf %163, %164 : vector<8x32xf32>
    %166 = vector.extract_strided_slice %11 {offsets = [32, 0], sizes = [8, 32], strides = [1, 1]} : vector<64x32xf32> to vector<8x32xf32>
    %167 = arith.addf %166, %155 : vector<8x32xf32>
    %168 = arith.negf %167 : vector<8x32xf32>
    %169 = math.exp %168 : vector<8x32xf32>
    %cst_54 = arith.constant 1.000000e+00 : f32
    %170 = vector.broadcast %cst_54 : f32 to vector<8x32xf32>
    %171 = arith.addf %170, %169 : vector<8x32xf32>
    %172 = arith.divf %170, %171 : vector<8x32xf32>
    %173 = vector.extract_strided_slice %16 {offsets = [32, 0], sizes = [8, 32], strides = [1, 1]} : vector<64x32xf32> to vector<8x32xf32>
    %174 = arith.mulf %165, %158 : vector<8x32xf32>
    %175 = arith.addf %173, %174 : vector<8x32xf32>
    %176 = math.tanh %175 : vector<8x32xf32>
    %cst_55 = arith.constant 1.000000e+00 : f32
    %177 = vector.broadcast %cst_55 : f32 to vector<8x32xf32>
    %178 = arith.subf %177, %172 : vector<8x32xf32>
    %179 = arith.mulf %178, %176 : vector<8x32xf32>
    %180 = arith.mulf %172, %153 : vector<8x32xf32>
    %181 = arith.addf %179, %180 : vector<8x32xf32>
    %c4_i32 = arith.constant 4 : i32
    %182 = vector.broadcast %c4_i32 : i32 to vector<8x1xi32>
    %183 = arith.cmpi sgt, %0, %182 : vector<8x1xi32>
    %184 = vector.shape_cast %183 : vector<8x1xi1> to vector<8x1xi1>
    %185 = vector.broadcast %184 : vector<8x1xi1> to vector<8x32xi1>
    %186 = arith.select %185, %181, %153 : vector<8x32xi1>, vector<8x32xf32>
    %cst_56 = arith.constant dense<0.000000e+00> : vector<8x32xf32>
    %187 = tpu.matmul %186, %17, %cst_56 {dimension_numbers = #tpu.dot_dimension_numbers<[1], [0], [0], [1], [0, 0, 1, 1], [], []>} : vector<8x32xf32>, vector<32x32xf32>, vector<8x32xf32> -> vector<8x32xf32>
    %cst_57 = arith.constant dense<0.000000e+00> : vector<8x32xf32>
    %188 = tpu.matmul %186, %18, %cst_57 {dimension_numbers = #tpu.dot_dimension_numbers<[1], [0], [0], [1], [0, 0, 1, 1], [], []>} : vector<8x32xf32>, vector<32x32xf32>, vector<8x32xf32> -> vector<8x32xf32>
    %cst_58 = arith.constant dense<0.000000e+00> : vector<8x32xf32>
    %189 = tpu.matmul %186, %19, %cst_58 {dimension_numbers = #tpu.dot_dimension_numbers<[1], [0], [0], [1], [0, 0, 1, 1], [], []>} : vector<8x32xf32>, vector<32x32xf32>, vector<8x32xf32> -> vector<8x32xf32>
    %190 = vector.broadcast %20 : vector<1x32xf32> to vector<8x32xf32>
    %191 = arith.addf %189, %190 : vector<8x32xf32>
    %192 = vector.extract_strided_slice %6 {offsets = [40, 0], sizes = [8, 32], strides = [1, 1]} : vector<64x32xf32> to vector<8x32xf32>
    %193 = arith.addf %192, %187 : vector<8x32xf32>
    %194 = arith.negf %193 : vector<8x32xf32>
    %195 = math.exp %194 : vector<8x32xf32>
    %cst_59 = arith.constant 1.000000e+00 : f32
    %196 = vector.broadcast %cst_59 : f32 to vector<8x32xf32>
    %197 = arith.addf %196, %195 : vector<8x32xf32>
    %198 = arith.divf %196, %197 : vector<8x32xf32>
    %199 = vector.extract_strided_slice %11 {offsets = [40, 0], sizes = [8, 32], strides = [1, 1]} : vector<64x32xf32> to vector<8x32xf32>
    %200 = arith.addf %199, %188 : vector<8x32xf32>
    %201 = arith.negf %200 : vector<8x32xf32>
    %202 = math.exp %201 : vector<8x32xf32>
    %cst_60 = arith.constant 1.000000e+00 : f32
    %203 = vector.broadcast %cst_60 : f32 to vector<8x32xf32>
    %204 = arith.addf %203, %202 : vector<8x32xf32>
    %205 = arith.divf %203, %204 : vector<8x32xf32>
    %206 = vector.extract_strided_slice %16 {offsets = [40, 0], sizes = [8, 32], strides = [1, 1]} : vector<64x32xf32> to vector<8x32xf32>
    %207 = arith.mulf %198, %191 : vector<8x32xf32>
    %208 = arith.addf %206, %207 : vector<8x32xf32>
    %209 = math.tanh %208 : vector<8x32xf32>
    %cst_61 = arith.constant 1.000000e+00 : f32
    %210 = vector.broadcast %cst_61 : f32 to vector<8x32xf32>
    %211 = arith.subf %210, %205 : vector<8x32xf32>
    %212 = arith.mulf %211, %209 : vector<8x32xf32>
    %213 = arith.mulf %205, %186 : vector<8x32xf32>
    %214 = arith.addf %212, %213 : vector<8x32xf32>
    %c5_i32 = arith.constant 5 : i32
    %215 = vector.broadcast %c5_i32 : i32 to vector<8x1xi32>
    %216 = arith.cmpi sgt, %0, %215 : vector<8x1xi32>
    %217 = vector.shape_cast %216 : vector<8x1xi1> to vector<8x1xi1>
    %218 = vector.broadcast %217 : vector<8x1xi1> to vector<8x32xi1>
    %219 = arith.select %218, %214, %186 : vector<8x32xi1>, vector<8x32xf32>
    %cst_62 = arith.constant dense<0.000000e+00> : vector<8x32xf32>
    %220 = tpu.matmul %219, %17, %cst_62 {dimension_numbers = #tpu.dot_dimension_numbers<[1], [0], [0], [1], [0, 0, 1, 1], [], []>} : vector<8x32xf32>, vector<32x32xf32>, vector<8x32xf32> -> vector<8x32xf32>
    %cst_63 = arith.constant dense<0.000000e+00> : vector<8x32xf32>
    %221 = tpu.matmul %219, %18, %cst_63 {dimension_numbers = #tpu.dot_dimension_numbers<[1], [0], [0], [1], [0, 0, 1, 1], [], []>} : vector<8x32xf32>, vector<32x32xf32>, vector<8x32xf32> -> vector<8x32xf32>
    %cst_64 = arith.constant dense<0.000000e+00> : vector<8x32xf32>
    %222 = tpu.matmul %219, %19, %cst_64 {dimension_numbers = #tpu.dot_dimension_numbers<[1], [0], [0], [1], [0, 0, 1, 1], [], []>} : vector<8x32xf32>, vector<32x32xf32>, vector<8x32xf32> -> vector<8x32xf32>
    %223 = vector.broadcast %20 : vector<1x32xf32> to vector<8x32xf32>
    %224 = arith.addf %222, %223 : vector<8x32xf32>
    %225 = vector.extract_strided_slice %6 {offsets = [48, 0], sizes = [8, 32], strides = [1, 1]} : vector<64x32xf32> to vector<8x32xf32>
    %226 = arith.addf %225, %220 : vector<8x32xf32>
    %227 = arith.negf %226 : vector<8x32xf32>
    %228 = math.exp %227 : vector<8x32xf32>
    %cst_65 = arith.constant 1.000000e+00 : f32
    %229 = vector.broadcast %cst_65 : f32 to vector<8x32xf32>
    %230 = arith.addf %229, %228 : vector<8x32xf32>
    %231 = arith.divf %229, %230 : vector<8x32xf32>
    %232 = vector.extract_strided_slice %11 {offsets = [48, 0], sizes = [8, 32], strides = [1, 1]} : vector<64x32xf32> to vector<8x32xf32>
    %233 = arith.addf %232, %221 : vector<8x32xf32>
    %234 = arith.negf %233 : vector<8x32xf32>
    %235 = math.exp %234 : vector<8x32xf32>
    %cst_66 = arith.constant 1.000000e+00 : f32
    %236 = vector.broadcast %cst_66 : f32 to vector<8x32xf32>
    %237 = arith.addf %236, %235 : vector<8x32xf32>
    %238 = arith.divf %236, %237 : vector<8x32xf32>
    %239 = vector.extract_strided_slice %16 {offsets = [48, 0], sizes = [8, 32], strides = [1, 1]} : vector<64x32xf32> to vector<8x32xf32>
    %240 = arith.mulf %231, %224 : vector<8x32xf32>
    %241 = arith.addf %239, %240 : vector<8x32xf32>
    %242 = math.tanh %241 : vector<8x32xf32>
    %cst_67 = arith.constant 1.000000e+00 : f32
    %243 = vector.broadcast %cst_67 : f32 to vector<8x32xf32>
    %244 = arith.subf %243, %238 : vector<8x32xf32>
    %245 = arith.mulf %244, %242 : vector<8x32xf32>
    %246 = arith.mulf %238, %219 : vector<8x32xf32>
    %247 = arith.addf %245, %246 : vector<8x32xf32>
    %c6_i32 = arith.constant 6 : i32
    %248 = vector.broadcast %c6_i32 : i32 to vector<8x1xi32>
    %249 = arith.cmpi sgt, %0, %248 : vector<8x1xi32>
    %250 = vector.shape_cast %249 : vector<8x1xi1> to vector<8x1xi1>
    %251 = vector.broadcast %250 : vector<8x1xi1> to vector<8x32xi1>
    %252 = arith.select %251, %247, %219 : vector<8x32xi1>, vector<8x32xf32>
    %cst_68 = arith.constant dense<0.000000e+00> : vector<8x32xf32>
    %253 = tpu.matmul %252, %17, %cst_68 {dimension_numbers = #tpu.dot_dimension_numbers<[1], [0], [0], [1], [0, 0, 1, 1], [], []>} : vector<8x32xf32>, vector<32x32xf32>, vector<8x32xf32> -> vector<8x32xf32>
    %cst_69 = arith.constant dense<0.000000e+00> : vector<8x32xf32>
    %254 = tpu.matmul %252, %18, %cst_69 {dimension_numbers = #tpu.dot_dimension_numbers<[1], [0], [0], [1], [0, 0, 1, 1], [], []>} : vector<8x32xf32>, vector<32x32xf32>, vector<8x32xf32> -> vector<8x32xf32>
    %cst_70 = arith.constant dense<0.000000e+00> : vector<8x32xf32>
    %255 = tpu.matmul %252, %19, %cst_70 {dimension_numbers = #tpu.dot_dimension_numbers<[1], [0], [0], [1], [0, 0, 1, 1], [], []>} : vector<8x32xf32>, vector<32x32xf32>, vector<8x32xf32> -> vector<8x32xf32>
    %256 = vector.broadcast %20 : vector<1x32xf32> to vector<8x32xf32>
    %257 = arith.addf %255, %256 : vector<8x32xf32>
    %258 = vector.extract_strided_slice %6 {offsets = [56, 0], sizes = [8, 32], strides = [1, 1]} : vector<64x32xf32> to vector<8x32xf32>
    %259 = arith.addf %258, %253 : vector<8x32xf32>
    %260 = arith.negf %259 : vector<8x32xf32>
    %261 = math.exp %260 : vector<8x32xf32>
    %cst_71 = arith.constant 1.000000e+00 : f32
    %262 = vector.broadcast %cst_71 : f32 to vector<8x32xf32>
    %263 = arith.addf %262, %261 : vector<8x32xf32>
    %264 = arith.divf %262, %263 : vector<8x32xf32>
    %265 = vector.extract_strided_slice %11 {offsets = [56, 0], sizes = [8, 32], strides = [1, 1]} : vector<64x32xf32> to vector<8x32xf32>
    %266 = arith.addf %265, %254 : vector<8x32xf32>
    %267 = arith.negf %266 : vector<8x32xf32>
    %268 = math.exp %267 : vector<8x32xf32>
    %cst_72 = arith.constant 1.000000e+00 : f32
    %269 = vector.broadcast %cst_72 : f32 to vector<8x32xf32>
    %270 = arith.addf %269, %268 : vector<8x32xf32>
    %271 = arith.divf %269, %270 : vector<8x32xf32>
    %272 = vector.extract_strided_slice %16 {offsets = [56, 0], sizes = [8, 32], strides = [1, 1]} : vector<64x32xf32> to vector<8x32xf32>
    %273 = arith.mulf %264, %257 : vector<8x32xf32>
    %274 = arith.addf %272, %273 : vector<8x32xf32>
    %275 = math.tanh %274 : vector<8x32xf32>
    %cst_73 = arith.constant 1.000000e+00 : f32
    %276 = vector.broadcast %cst_73 : f32 to vector<8x32xf32>
    %277 = arith.subf %276, %271 : vector<8x32xf32>
    %278 = arith.mulf %277, %275 : vector<8x32xf32>
    %279 = arith.mulf %271, %252 : vector<8x32xf32>
    %280 = arith.addf %278, %279 : vector<8x32xf32>
    %c7_i32 = arith.constant 7 : i32
    %281 = vector.broadcast %c7_i32 : i32 to vector<8x1xi32>
    %282 = arith.cmpi sgt, %0, %281 : vector<8x1xi32>
    %283 = vector.shape_cast %282 : vector<8x1xi1> to vector<8x1xi1>
    %284 = vector.broadcast %283 : vector<8x1xi1> to vector<8x32xi1>
    %285 = arith.select %284, %280, %252 : vector<8x32xi1>, vector<8x32xf32>
    %286 = vector.extract_strided_slice %285 {offsets = [0, 0], sizes = [2, 32], strides = [1, 1]} : vector<8x32xf32> to vector<2x32xf32>
    %287 = vector.extract_strided_slice %285 {offsets = [2, 0], sizes = [2, 32], strides = [1, 1]} : vector<8x32xf32> to vector<2x32xf32>
    %c0_74 = arith.constant 0 : index
    %c0_75 = arith.constant 0 : index
    %288 = vector.load %arg12[%c0_74, %c0_75] : memref<32x2xf32, #tpu.memory_space<vmem>>, vector<32x2xf32>
    %cst_76 = arith.constant dense<0.000000e+00> : vector<2x2xf32>
    %289 = tpu.matmul %286, %288, %cst_76 {dimension_numbers = #tpu.dot_dimension_numbers<[1], [0], [0], [1], [0, 0, 1, 1], [], []>} : vector<2x32xf32>, vector<32x2xf32>, vector<2x2xf32> -> vector<2x2xf32>
    %c0_77 = arith.constant 0 : index
    %c0_78 = arith.constant 0 : index
    %290 = vector.load %arg13[%c0_77, %c0_78] : memref<32x2xf32, #tpu.memory_space<vmem>>, vector<32x2xf32>
    %cst_79 = arith.constant dense<0.000000e+00> : vector<2x2xf32>
    %291 = tpu.matmul %287, %290, %cst_79 {dimension_numbers = #tpu.dot_dimension_numbers<[1], [0], [0], [1], [0, 0, 1, 1], [], []>} : vector<2x32xf32>, vector<32x2xf32>, vector<2x2xf32> -> vector<2x2xf32>
    %292 = arith.addf %289, %291 : vector<2x2xf32>
    %c0_80 = arith.constant 0 : index
    %c0_81 = arith.constant 0 : index
    %293 = vector.load %arg14[%c0_80, %c0_81] : memref<1x2xf32, #tpu.memory_space<vmem>>, vector<1x2xf32>
    %294 = vector.broadcast %293 : vector<1x2xf32> to vector<2x2xf32>
    %295 = arith.addf %292, %294 : vector<2x2xf32>
    %cst_82 = arith.constant dense<0xFF800000> : vector<2xf32>
    %296 = vector.multi_reduction <maximumf>, %295, %cst_82 [1] : vector<2x2xf32> to vector<2xf32>
    %297 = vector.shape_cast %296 : vector<2xf32> to vector<2x1xf32>
    %298 = vector.broadcast %297 : vector<2x1xf32> to vector<2x2xf32>
    %299 = arith.subf %295, %298 : vector<2x2xf32>
    %300 = math.exp %299 : vector<2x2xf32>
    %cst_83 = arith.constant dense<0.000000e+00> : vector<2xf32>
    %301 = vector.multi_reduction <add>, %300, %cst_83 [1] : vector<2x2xf32> to vector<2xf32>
    %302 = vector.shape_cast %301 : vector<2xf32> to vector<2x1xf32>
    %303 = vector.broadcast %302 : vector<2x1xf32> to vector<2x2xf32>
    %304 = arith.divf %300, %303 : vector<2x2xf32>
    %c0_84 = arith.constant 0 : index
    %c0_85 = arith.constant 0 : index
    %305 = vector.load %arg15[%c0_84, %c0_85] : memref<2x2xf32, #tpu.memory_space<vmem>>, vector<2x2xf32>
    tpu.vector_store %arg15[%c0_84, %c0_85], %304 {strides = array<i32>} : memref<2x2xf32, #tpu.memory_space<vmem>>, vector<2x2xf32>,
    return
  }
}

</mosaic_0001>

<bundles_post_ra>
// kernel: tpu_custom_call.1
= control target key start
LH: loop header
LB: loop body
LE: loop exit
PB: predicated region body
PF: predicated region fallthrough
CT: control target
= control target key end

     0   :  { %20 = vsyncpa [#allocation3], 0  ;;  %s4066_s0 = inlined_call_operand.vmem [shape: f32[64,32], index: 0, kind: input, shape index: {}]   ;;  %s4067_s1 = inlined_call_operand.vmem [shape: s32[8,1], index: 1, kind: input, shape index: {}]   ;;  %s4068_s2 = inlined_call_operand.vmem [shape: f32[32,32], index: 2, kind: input, shape index: {}]   ;;  %s4069_s3 = inlined_call_operand.vmem [shape: f32[32,32], index: 3, kind: input, shape index: {}]   ;;  %s4070_s4 = inlined_call_operand.vmem [shape: f32[32,32], index: 4, kind: input, shape index: {}]   ;;  %s4071_s5 = inlined_call_operand.vmem [shape: f32[32,32], index: 5, kind: input, shape index: {}]   ;;  %s4072_s6 = inlined_call_operand.vmem [shape: f32[32,32], index: 6, kind: input, shape index: {}]   ;;  %s4073_s7 = inlined_call_operand.hbm [shape: f32[32,32], index: 7, kind: input, shape index: {}]   ;;  %s4074_s8 = inlined_call_operand.vmem [shape: f32[1,32], index: 8, kind: input, shape index: {}]   ;;  %s4075_s9 = inlined_call_operand.vmem [shape: f32[1,32], index: 9, kind: input, shape index: {}]   ;;  %s4076_s10 = inlined_call_operand.vmem [shape: f32[1,32], index: 10, kind: input, shape index: {}]   ;;  %s4077_s11 = inlined_call_operand.vmem [shape: f32[1,32], index: 11, kind: input, shape index: {}]   ;;  %s4078_s12 = inlined_call_operand.vmem [shape: f32[32,2], index: 12, kind: input, shape index: {}]   ;;  %s4079_s13 = inlined_call_operand.vmem [shape: f32[32,2], index: 13, kind: input, shape index: {}]   ;;  %s4080_s14 = inlined_call_operand.vmem [shape: f32[1,2], index: 14, kind: input, shape index: {}]   ;;  %s4081_s15 = inlined_call_operand.hbm [shape: f32[2,2], index: 15, kind: output, shape index: {}]  }
   0x1   :  { %21 = vsyncpa [#allocation4], 0  ;;  %s3486_s18 = smov [#allocation2]   ;;  %s3438_s22 = scalar_lea.hbm %s4073_s7, 512 }
   0x2   :  { %s41_s19 = sshll.u32 %s3486_s18, 4  ;;  %p3439_p0 = scmp.ne.s32.totalorder %s4073_s7, %s3438_s22  ;;  %s42_s19 = int_to_ptr.vmem [resolvable:$true] %s41_s19 }
   0x3   :  { %p3442_p1 = scmp.lt.u32.totalorder %s3438_s22, %s4073_s7 }
   0x5   :  { %p3444_p2 = pnand %p3442_p1, %p3439_p0 }
   0x7   :  { %3447 = shalt.err (!%p3444_p2)
}
   0x8   :  { %s3448_s27 = scalar_lea.vmem %s42_s19, 512  ;;  %p3453_p4 = scmp.lt.s32.totalorder %s42_s19, %s42_s19 }
   0x9   :  { %p3449_p3 = scmp.ne.s32.totalorder %s42_s19, %s3448_s27  ;;  %p3454_p5 = scmp.lt.s32.totalorder %s3448_s27, %s3448_s27 }
   0xb   :  { %p3455_p6 = por %p3454_p5, %p3453_p4 }
   0xd   :  { %p3456_p7 = pnand %p3455_p6, %p3449_p3 }
   0xf   :  { %3459 = shalt.err (!%p3456_p7)
}
  0x10   :  { %s3487_s28 = smov 128   ;;  %s3488_s29 = smov 8  }
  0x11   :  { %47 = dma.hbm_to_vmem [thread:$0]  %s4073_s7, 512, %s42_s19, [#allocation3], %s3487_s28, %s3487_s28, %s3488_s29  }
  0x12   :  { %3482 = dma.done.wait [#allocation3], 512  }
  0x13   :  { %3483 = vsyncadd [#allocation3], 4294966784  ;;  %v3489_v0 = vmov 0   ;;  %vm85_vm0 = vcmask 261120   ;;  %v215_v1 = vld [vmem:[%s4069_s3] sm:$0xff]  ;;  %v216_v2 = vld [vmem:[%s4069_s3 + $0x8] sm:$0xff] }
  0x14   :  { %3352 = vset.pattern.permute.xlu0 %v3489_v0  ;;  %3353 = vset.pattern.permute.xlu1 %v3489_v0  ;;  %v217_v3 = vld [vmem:[%s4069_s3 + $0x10] sm:$0xff]  ;;  %v3172_v4 = vpack.c.bf16 %v216_v2, %v215_v1  ;;  %v218_v5 = vld [vmem:[%s4069_s3 + $0x18] sm:$0xff]  ;;  %v3603_v6 = vld [vmem:[%s4066_s0] sm:$0xff]  ;;  %v3490_v20 = vmov 0.0|0.0   ;;  %vm3491_vm5 = vmmov 0   ;;  %v3492_v40 = vmov 0.0  }
  0x15   :  { %v3176_v7 = vpack.c.bf16 %v218_v5, %v217_v3  ;;  %2846 = vmatprep.mubr.msk.f32.mxu1 %vm85_vm0, %v3603_v6  ;;  %v74_v8 = vld [vmem:[%s4068_s2] sm:$0xff]  ;;  %2826 = vmatprep.mubr.msk.f32.mxu0 %vm85_vm0, %v3603_v6  ;;  %v75_v9 = vld [vmem:[%s4068_s2 + $0x8] sm:$0xff]  ;;  %v76_v11 = vld [vmem:[%s4068_s2 + $0x10] sm:$0xff]  ;;  %s3493_s30 = smov [#allocation5]  }
  0x16   :  { %3173 = vmatprep.subr.bf16.mxu1 %v3172_v4  ;;  %v3164_v10 = vpack.c.bf16 %v75_v9, %v74_v8  ;;  %v77_v12 = vld [vmem:[%s4068_s2 + $0x18] sm:$0xff]  ;;  %v447_v13 = vld [vmem:[%s4071_s5] sm:$0xff]  ;;  %v448_v14 = vld [vmem:[%s4071_s5 + $0x8] sm:$0xff]  ;;  %s2575_s16 = sshll.u32 %s3493_s30, 4  ;;  %s2576_s16 = int_to_ptr.vmem [resolvable:$true] %s2575_s16 }
  0x17   :  { %3175 = vmatpush3.bf16.msra.mxu1 %v3172_v4  ;;  %v3168_v15 = vpack.c.bf16 %v77_v12, %v76_v11  ;;  %v331_v16 = vld [vmem:[%s4070_s4] sm:$0xff]  ;;  %v332_v17 = vld [vmem:[%s4070_s4 + $0x8] sm:$0xff]  ;;  %v3638_v19 = vpack.c.bf16 %v448_v14, %v447_v13  ;;  %v3644_v21 = vld [vmem:[%s4066_s0 + $0x10] sm:$0xff]  ;;  %p3465_p9 = scmp.lt.s32.totalorder %s2576_s16, %s2576_s16 }
  0x18   :  { %3177 = vmatprep.subr.bf16.mxu1 %v3176_v7  ;;  %3165 = vmatprep.subr.bf16.mxu0 %v3164_v10  ;;  %v3636_v18 = vld [vmem:[%s4066_s0 + $0x8] sm:$0xff]  ;;  %v449_v22 = vld [vmem:[%s4071_s5 + $0x10] sm:$0xff]  ;;  %v450_v23 = vld [vmem:[%s4071_s5 + $0x18] sm:$0xff]  ;;  %v3180_v24 = vpack.c.bf16 %v332_v17, %v331_v16 }
  0x19   :  { %3167 = vmatpush3.bf16.msra.mxu0 %v3164_v10  ;;  %v3655_v25 = vld [vmem:[%s4067_s1] sm:$0xff]  ;;  %v333_v26 = vld [vmem:[%s4070_s4 + $0x10] sm:$0xff]  ;;  %v334_v27 = vld [vmem:[%s4070_s4 + $0x18] sm:$0xff]  ;;  %v3674_v29 = vpack.c.bf16 %v450_v23, %v449_v22 }
  0x1a   :  { %3169 = vmatprep.subr.bf16.mxu0 %v3168_v15  ;;  %vm700_vm1 = vcmp.gt.s32.totalorder %v3655_v25, 0  ;;  %v3672_v28 = vld [vmem:[%s4066_s0 + $0x18] sm:$0xff]  ;;  %v3680_v31 = vld [vmem:[%s4066_s0 + $0x20] sm:$0xff]  ;;  %v3184_v32 = vpack.c.bf16 %v334_v27, %v333_v26  ;;  %vm941_vm2 = vcmp.gt.s32.totalorder %v3655_v25, 1  ;;  %v71_v33 = vld [vmem:[%s4066_s0 + $0x28] sm:$0xff]  ;;  %vm1664_vm3 = vcmp.gt.s32.totalorder %v3655_v25, 4 }
  0x1b   :  { %3179 = vmatpush3.bf16.msra.mxu1 %v3176_v7  ;;  %v701_v30 = vsel %vm700_vm1, 1, %v3489_v0  ;;  %v72_v34 = vld [vmem:[%s4066_s0 + $0x30] sm:$0xff]  ;;  %v942_v35 = vsel %vm941_vm2, 1, %v3489_v0  ;;  %v73_v36 = vld [vmem:[%s4066_s0 + $0x38] sm:$0xff]  ;;  %v451_v37 = vld [vmem:[%s4072_s6] sm:$0xff]  ;;  %v1665_v39 = vsel %vm1664_vm3, 1, %v3489_v0 }
  0x1c   :  { %3188 = vmatprep.subr.bf16.mxu1 %v3490_v20  ;;  %703 = vperm.xlu0 %3352, %v701_v30   ;;  %v452_v38 = vld [vmem:[%s4072_s6 + $0x8] sm:$0xff]  ;;  %vm2146_vm4 = vcmp.gt.s32.totalorder %v3655_v25, 6  ;;  %v455_v42 = vld [vmem:[#allocation2] sm:$0xff]  ;;  %v453_v44 = vld [vmem:[%s4072_s6 + $0x10] sm:$0xff]  ;;  %vm1182_vm7 = vcmp.gt.s32.totalorder %v3655_v25, 2  ;;  %vm1423_vm8 = vcmp.gt.s32.totalorder %v3655_v25, 3 }
  0x1d   :  { %3171 = vmatpush3.bf16.msra.mxu0 %v3168_v15  ;;  %v3725_v41 = vpack.c.bf16 %v452_v38, %v451_v37  ;;  %v456_v43 = vld [vmem:[#allocation2 + $0x8] sm:$0xff]  ;;  %v454_v45 = vld [vmem:[%s4072_s6 + $0x18] sm:$0xff]  ;;  %v2147_v46 = vsel %vm2146_vm4, 1, %v3489_v0  ;;  %v457_v49 = vld [vmem:[#allocation2 + $0x10] sm:$0xff]  ;;  %vm1905_vm9 = vcmp.gt.s32.totalorder %v3655_v25, 5  ;;  %vm2387_vm10 = vcmp.gt.s32.totalorder %v3655_v25, 7 }
  0x1e   :  { %2847 = vmatmul.mubr.msk.f32.vlgmr.msra.gmra.mrb[0].mxu1 %vm85_vm0, %v3636_v18  ;;  %3181 = vmatprep.subr.bf16.mxu0 %v3180_v24  ;;  %v3738_v47 = vpack.c.bf16 %v456_v43, %v455_v42  ;;  %v3741_v48 = vpack.c.bf16 %v454_v45, %v453_v44  ;;  %v458_v50 = vld [vmem:[#allocation2 + $0x18] sm:$0xff]  ;;  %v2593_v52 = vld [vmem:[%s4075_s9] ss:$0 sm:$0xff]  ;;  %vm2556_vm3 = vcmask 9216  }
  0x1f   :  { %3190 = vmatpush3.bf16.msra.mxu1 %v3638_v19  ;;  %2849 = vmatprep.mubr.msk.f32.mxu1 %vm85_vm0, %v3644_v21  ;;  %v3753_v51 = vpack.c.bf16 %v458_v50, %v457_v49  ;;  %v2584_v56 = vld [vmem:[%s4074_s8] ss:$0 sm:$0xff] }
  0x20   :  { %3191 = vmatprep.subr.bf16.mxu1 %v3490_v20  ;;  %2827 = vmatmul.mubr.msk.f32.vlgmr.msra.gmra.mrb[0].mxu0 %vm85_vm0, %v3636_v18 }
  0x21   :  { %3183 = vmatpush3.bf16.msra.mxu0 %v3180_v24  ;;  %2829 = vmatprep.mubr.msk.f32.mxu0 %vm85_vm0, %v3644_v21 }
  0x22   :  { %2850 = vmatmul.mubr.msk.f32.gmra.mrb[2].mxu1 %vm85_vm0, %v3672_v28  ;;  %3185 = vmatprep.subr.bf16.mxu0 %v3184_v32 }
  0x23   :  { %2852 = vmatprep.mubr.msk.f32.mxu1 %vm85_vm0, %v3680_v31  ;;  %3193 = vmatpush3.bf16.msra.mxu1 %v3674_v29 }
  0x24   :  { %3194 = vmatprep.subr.bf16.mxu1 %v3490_v20  ;;  %2830 = vmatmul.mubr.msk.f32.gmra.mrb[2].mxu0 %vm85_vm0, %v3672_v28 }
  0x25   :  { %2832 = vmatprep.mubr.msk.f32.mxu0 %vm85_vm0, %v3680_v31  ;;  %3187 = vmatpush3.bf16.msra.mxu0 %v3184_v32 }
  0x26   :  { %2853 = vmatmul.mubr.msk.f32.gmra.mrb[4].mxu1 %vm85_vm0, %v71_v33  ;;  %3200 = vmatprep.subr.bf16.mxu0 %v3490_v20 }
  0x27   :  { %2855 = vmatprep.mubr.msk.f32.mxu1 %vm85_vm0, %v72_v34  ;;  %944 = vperm.xlu0 %3352, %v942_v35  }
  0x28   :  { %2833 = vmatmul.mubr.msk.f32.gmra.mrb[4].mxu0 %vm85_vm0, %v71_v33 }
  0x29   :  { %2835 = vmatprep.mubr.msk.f32.mxu0 %vm85_vm0, %v72_v34 }
  0x2a   :  { %2856 = vmatmul.mubr.msk.f32.gmra.mrb[6].mxu1 %vm85_vm0, %v73_v36 }
  0x2b   :  { %2886 = vmatprep.mubr.msk.f32.mxu1 %vm3491_vm5, %v3492_v40  ;;  %1667 = vperm.xlu0 %3352, %v1665_v39  }
  0x2c   :  { %2836 = vmatmul.mubr.msk.f32.gmra.mrb[6].mxu0 %vm85_vm0, %v73_v36 }
  0x2d   :  { %2866 = vmatprep.mubr.msk.f32.mxu0 %vm85_vm0, %v3603_v6 }
  0x2e   :  { %2887 = vmatmul.mubr.f32.vlgmr.msra.gmra.mrb[8].mxu1 %v3492_v40 }
  0x2f   :  { %3196 = vmatpush3.bf16.msra.mxu1 %v3725_v41  ;;  %2897 = vmatprep.mubr.msk.f32.mxu1 %vm3491_vm5, %v3492_v40 }
  0x30   :  { %3197 = vmatprep.subr.bf16.mxu1 %v3490_v20  ;;  %2149 = vperm.xlu0 %3352, %v2147_v46  }
  0x31   :  { %2867 = vmatmul.mubr.msk.f32.vlgmr.msra.gmra.mrb[8].mxu0 %vm85_vm0, %v3636_v18 }
  0x32   :  { %3202 = vmatpush3.bf16.msra.mxu0 %v3738_v47  ;;  %2869 = vmatprep.mubr.msk.f32.mxu0 %vm85_vm0, %v3644_v21 }
  0x33   :  { %3199 = vmatpush3.bf16.msra.mxu1 %v3741_v48  ;;  %3203 = vmatprep.subr.bf16.mxu0 %v3490_v20 }
  0x34   :  { %3206 = vmatprep.subr.bf16.mxu1 %v3490_v20 }
  0x35   :  { %2870 = vmatmul.mubr.msk.f32.gmra.mrb[10].mxu0 %vm85_vm0, %v3672_v28  ;;  %v2602_v28 = vld [vmem:[%s4076_s10] ss:$0 sm:$0xff] }
  0x36   :  { %2898 = vmatmul.mubr.f32.vlgmr.msra.gmra.mrb[10].mxu1 %v3492_v40  ;;  %2872 = vmatprep.mubr.msk.f32.mxu0 %vm85_vm0, %v3680_v31 }
  0x37   :  { %3205 = vmatpush3.bf16.msra.mxu0 %v3753_v51  ;;  %3208 = vmatpush3.bf16.msra.mxu1 %v3638_v19 }
  0x38   :  { %3212 = vmatprep.subr.bf16.mxu0 %v3490_v20  ;;  %3209 = vmatprep.subr.bf16.mxu1 %v3490_v20 }
  0x39   :  { %2873 = vmatmul.mubr.msk.f32.gmra.mrb[12].mxu0 %vm85_vm0, %v71_v33  ;;  %2919 = vmatprep.mubr.msk.f32.mxu1 %vm3491_vm5, %v3492_v40 }
  0x3a   :  { %2875 = vmatprep.mubr.msk.f32.mxu0 %vm85_vm0, %v72_v34 }
  0x3b   :  { %3211 = vmatpush3.bf16.msra.mxu1 %v3674_v29 }
  0x3c   :  { %3218 = vmatprep.subr.bf16.mxu1 %v3490_v20 }
  0x3d   :  { %2876 = vmatmul.mubr.msk.f32.gmra.mrb[14].mxu0 %vm85_vm0, %v73_v36 }
  0x3e   :  { %2908 = vmatprep.mubr.msk.f32.mxu0 %vm3491_vm5, %v3492_v40 }
  0x41   :  { %2909 = vmatmul.mubr.f32.vlgmr.msra.gmra.mrb[16].mxu0 %v3492_v40 }
  0x42   :  { %3214 = vmatpush3.bf16.msra.mxu0 %v3725_v41  ;;  %2930 = vmatprep.mubr.msk.f32.mxu0 %vm3491_vm5, %v3492_v40 }
  0x43   :  { %3215 = vmatprep.subr.bf16.mxu0 %v3490_v20 }
  0x46   :  { %3217 = vmatpush3.bf16.msra.mxu0 %v3741_v48 }
  0x47   :  { %3224 = vmatprep.subr.bf16.mxu0 %v3490_v20 }
  0xf1   :  { %v2848_v53 = vpop.f32.mrb[0].mxu1 }
  0xf2   :  { %v3784_v54 = vadd.f32 %v2848_v53, %v2593_v52  ;;  %v292_v55 = vpop.f32.mrb[1].mxu1 }
  0xf3   :  { %v2828_v57 = vpop.f32.mrb[0].mxu0  ;;  %v293_v34 = vadd.f32 %v2593_v52, %v292_v55 }
  0xf4   :  { %v3789_v59 = vadd.f32 %v2828_v57, %v2584_v56  ;;  %v176_v60 = vpop.f32.mrb[1].mxu0 }
  0xf5   :  { %v2851_v58 = vpop.f32.mrb[2].mxu1  ;;  %v177_v17 = vadd.f32 %v2584_v56, %v176_v60 }
  0xf6   :  { %v3791_v61 = vadd.f32 %v2851_v58, %v2593_v52  ;;  %v302_v62 = vpop.f32.mrb[3].mxu1 }
  0xf7   :  { %v3793_v63 = vadd.f32 %v2593_v52, %v302_v62  ;;  %v2831_v1 = vpop.f32.mrb[2].mxu0 }
  0xf8   :  { %v3795_v3 = vadd.f32 %v2831_v1, %v2584_v56  ;;  %v186_v4 = vpop.f32.mrb[3].mxu0  ;;  %v3835_v1 = vld [vmem:[%s4077_s11] ss:$0 sm:$0xff] }
  0xf9   :  { %v2854_v2 = vpop.f32.mrb[4].mxu1  ;;  %v3799_v7 = vadd.f32 %v2584_v56, %v186_v4 }
  0xfa   :  { %v3797_v5 = vadd.f32 %v2854_v2, %v2593_v52  ;;  %v312_v6 = vpop.f32.mrb[5].mxu1 }
  0xfb   :  { %v3801_v8 = vadd.f32 %v2593_v52, %v312_v6  ;;  %v2834_v9 = vpop.f32.mrb[4].mxu0 }
  0xfc   :  { %v3803_v11 = vadd.f32 %v2834_v9, %v2584_v56  ;;  %v196_v12 = vpop.f32.mrb[5].mxu0 }
  0xfd   :  { %v2857_v10 = vpop.f32.mrb[6].mxu1  ;;  %v3807_v15 = vadd.f32 %v2584_v56, %v196_v12 }
  0xfe   :  { %v3805_v13 = vadd.f32 %v2857_v10, %v2593_v52  ;;  %v322_v14 = vpop.f32.mrb[7].mxu1 }
  0xff   :  { %v3809_v16 = vadd.f32 %v2593_v52, %v322_v14  ;;  %v2837_v18 = vpop.f32.mrb[6].mxu0 }
 0x100   :  { %v3811_v22 = vadd.f32 %v2837_v18, %v2584_v56  ;;  %v206_v23 = vpop.f32.mrb[7].mxu0 }
 0x101   :  { %v529_v21 = vpop.f32.mrb[8].mxu1  ;;  %v3813_v27 = vadd.f32 %v2584_v56, %v206_v23 }
 0x102   :  { %v679_v24 = vadd.f32 %v529_v21, %v177_v17  ;;  %v2888_v26 = vpop.f32.mrb[9].mxu1 }
 0x103   :  { %v704_v26 = vpop.permute.xlu0 %703 }
 0x104   :  { %v2612_v30 = vmul.f32 -1.442695, %v679_v24  ;;  %v2868_v31 = vpop.f32.mrb[8].mxu0  ;;  %vm705_vm6 = vcmp.eq.s32.totalorder %v704_v26, 1 }
 0x105   :  { %v3818_v32 = vadd.f32 %v2868_v31, %v2602_v28  ;;  %v408_v33 = vpop.f32.mrb[9].mxu0 }
 0x106   :  { %3354 = vpow2.f32 %v2612_v30  ;;  %v409_v10 = vadd.f32 %v2602_v28, %v408_v33  ;;  %v1424_v33 = vsel %vm1423_vm8, 1, %v3489_v0 }
 0x108   :  { %v2871_v35 = vpop.f32.mrb[10].mxu0 }
 0x109   :  { %v599_v36 = vpop.f32.mrb[10].mxu1  ;;  %v3820_v37 = vadd.f32 %v2871_v35, %v2602_v28  ;;  %v418_v38 = vpop.f32.mrb[11].mxu0  ;;  %v2388_v35 = vsel %vm2387_vm10, 1, %v3489_v0 }
 0x10a   :  { %v686_v39 = vadd.f32 %v599_v36, %v293_v34  ;;  %v2899_v42 = vpop.f32.mrb[11].mxu1  ;;  %v3822_v43 = vadd.f32 %v2602_v28, %v418_v38  ;;  %v1906_v34 = vsel %vm1905_vm9, 1, %v3489_v0 }
 0x10c   :  { %v2613_v44 = vmul.f32 -1.442695, %v686_v39  ;;  %v2874_v45 = vpop.f32.mrb[12].mxu0 }
 0x10d   :  { %v3824_v46 = vadd.f32 %v2874_v45, %v2602_v28  ;;  %v428_v49 = vpop.f32.mrb[13].mxu0 }
 0x10e   :  { %3356 = vpow2.f32 %v2613_v44  ;;  %v3826_v50 = vadd.f32 %v2602_v28, %v428_v49 }
 0x110   :  { %v3355_v53 = vpop.eup %3354  ;;  %v2877_v56 = vpop.f32.mrb[14].mxu0 }
 0x111   :  { %v683_v52 = vadd.f32 1.0, %v3355_v53  ;;  %v3828_v55 = vadd.f32 %v2877_v56, %v2602_v28  ;;  %v438_v57 = vpop.f32.mrb[15].mxu0 }
 0x112   :  { %v3830_v58 = vadd.f32 %v2602_v28, %v438_v57  ;;  %v1183_v28 = vsel %vm1182_vm7, 1, %v3489_v0 }
 0x113   :  { %3358 = vrcp.f32 %v683_v52  ;;  %1185 = vperm.xlu1 %3353, %v1183_v28  }
 0x114   :  { %v675_v60 = vpop.f32.mrb[16].mxu0 }
 0x115   :  { %v2910_v62 = vpop.f32.mrb[17].mxu0  ;;  %v676_v6 = vadd.f32 %v3835_v1, %v675_v60 }
 0x117   :  { %1426 = vperm.xlu1 %3353, %v1424_v33  }
 0x118   :  { %v3357_v2 = vpop.eup %3356 }
 0x119   :  { %v690_v4 = vadd.f32 1.0, %v3357_v2 }
 0x11b   :  { %3360 = vrcp.f32 %v690_v4  ;;  %1908 = vperm.xlu1 %3353, %v1906_v34  }
 0x11d   :  { %v3359_v9 = vpop.eup %3358 }
 0x11e   :  { %v693_v12 = vmul.f32 %v3359_v9, %v676_v6 }
 0x11f   :  { %2390 = vperm.xlu1 %3353, %v2388_v35  }
 0x120   :  { %v694_v14 = vadd.f32 %v693_v12, %v409_v10 }
 0x122   :  { %3362 = vtanh.f32 %v694_v14  ;;  %v945_v14 = vpop.permute.xlu0 %944 }
 0x123   :  { %vm946_vm11 = vcmp.eq.s32.totalorder %v945_v14, 1 }
 0x125   :  { %v3361_v17 = vpop.eup %3360 }
 0x126   :  { %v696_v18 = vsub.f32 1.0, %v3361_v17  ;;  %v698_v24 = vmul.f32 0.0, %v3361_v17 }
 0x12c   :  { %v3363_v21 = vpop.eup %3362 }
 0x12d   :  { %v697_v23 = vmul.f32 %v3363_v21, %v696_v18 }
 0x12f   :  { %v699_v30 = vadd.f32 %v698_v24, %v697_v23 }
 0x131   :  { %v3838_v31 = vsel %vm705_vm6, %v699_v30, 0.0 }
 0x132   :  { %2920 = vmatmul.mubr.msk.f32.vlgmr.msra.gmra.mrb[12].mxu1 %vm85_vm0, %v3838_v31  ;;  %2931 = vmatmul.mubr.msk.f32.vlgmr.msra.gmra.mrb[18].mxu0 %vm85_vm0, %v3838_v31 }
 0x133   :  { %3220 = vmatpush3.bf16.msra.mxu1 %v3738_v47  ;;  %2941 = vmatprep.mubr.msk.f32.mxu1 %vm3491_vm5, %v3492_v40 }
 0x134   :  { %3221 = vmatprep.subr.bf16.mxu1 %v3490_v20  ;;  %3226 = vmatpush3.bf16.msra.mxu0 %v3638_v19 }
 0x135   :  { %3227 = vmatprep.subr.bf16.mxu0 %v3490_v20  ;;  %2952 = vmatprep.mubr.msk.f32.mxu0 %vm3491_vm5, %v3492_v40 }
 0x137   :  { %3223 = vmatpush3.bf16.msra.mxu1 %v3753_v51 }
 0x138   :  { %3230 = vmatprep.subr.bf16.mxu1 %v3490_v20  ;;  %3229 = vmatpush3.bf16.msra.mxu0 %v3674_v29 }
 0x139   :  { %3236 = vmatprep.subr.bf16.mxu0 %v3490_v20 }
 0x13a   :  { %2942 = vmatmul.mubr.msk.f32.vlgmr.msra.gmra.mrb[14].mxu1 %vm85_vm0, %v3838_v31 }
 0x13b   :  { %3232 = vmatpush3.bf16.msra.mxu1 %v3725_v41  ;;  %2963 = vmatprep.mubr.msk.f32.mxu1 %vm3491_vm5, %v3492_v40 }
 0x13c   :  { %3233 = vmatprep.subr.bf16.mxu1 %v3490_v20 }
 0x13f   :  { %3235 = vmatpush3.bf16.msra.mxu1 %v3741_v48 }
 0x140   :  { %3242 = vmatprep.subr.bf16.mxu1 %v3490_v20 }
 0x205   :  { %v776_v36 = vpop.f32.mrb[12].mxu1  ;;  %v846_v38 = vpop.f32.mrb[18].mxu0 }
 0x206   :  { %v920_v39 = vadd.f32 %v776_v36, %v3789_v59  ;;  %v927_v42 = vadd.f32 %v846_v38, %v3784_v54  ;;  %v2921_v44 = vpop.f32.mrb[13].mxu1  ;;  %v2932_v45 = vpop.f32.mrb[19].mxu0 }
 0x208   :  { %v2617_v49 = vmul.f32 -1.442695, %v920_v39  ;;  %v2618_v53 = vmul.f32 -1.442695, %v927_v42 }
 0x20a   :  { %3364 = vpow2.f32 %v2617_v49 }
 0x20b   :  { %3366 = vpow2.f32 %v2618_v53 }
 0x20d   :  { %v916_v56 = vpop.f32.mrb[14].mxu1 }
 0x20e   :  { %v2943_v52 = vpop.f32.mrb[15].mxu1  ;;  %v917_v62 = vadd.f32 %v3835_v1, %v916_v56  ;;  %v1186_v56 = vpop.permute.xlu1 %1185 }
 0x20f   :  { %vm1187_vm12 = vcmp.eq.s32.totalorder %v1186_v56, 1 }
 0x214   :  { %v3365_v57 = vpop.eup %3364 }
 0x215   :  { %v924_v25 = vadd.f32 1.0, %v3365_v57  ;;  %v3367_v60 = vpop.eup %3366 }
 0x216   :  { %v931_v0 = vadd.f32 1.0, %v3367_v60 }
 0x217   :  { %3368 = vrcp.f32 %v924_v25 }
 0x218   :  { %3370 = vrcp.f32 %v931_v0 }
 0x221   :  { %v3369_v2 = vpop.eup %3368 }
 0x222   :  { %v934_v59 = vmul.f32 %v3369_v2, %v917_v62  ;;  %v3371_v4 = vpop.eup %3370 }
 0x223   :  { %v937_v6 = vsub.f32 1.0, %v3371_v4  ;;  %v939_v12 = vmul.f32 %v3371_v4, %v3838_v31 }
 0x224   :  { %v935_v54 = vadd.f32 %v934_v59, %v3818_v32 }
 0x226   :  { %3372 = vtanh.f32 %v935_v54 }
 0x230   :  { %v3373_v9 = vpop.eup %3372 }
 0x231   :  { %v938_v10 = vmul.f32 %v3373_v9, %v937_v6 }
 0x233   :  { %v940_v17 = vadd.f32 %v939_v12, %v938_v10 }
 0x235   :  { %v947_v18 = vsel %vm946_vm11, %v940_v17, %v3838_v31 }
 0x236   :  { %2953 = vmatmul.mubr.msk.f32.vlgmr.msra.gmra.mrb[20].mxu0 %vm85_vm0, %v947_v18  ;;  %2964 = vmatmul.mubr.msk.f32.vlgmr.msra.gmra.mrb[16].mxu1 %vm85_vm0, %v947_v18 }
 0x237   :  { %3238 = vmatpush3.bf16.msra.mxu0 %v3738_v47  ;;  %2974 = vmatprep.mubr.msk.f32.mxu0 %vm3491_vm5, %v3492_v40 }
 0x238   :  { %3239 = vmatprep.subr.bf16.mxu0 %v3490_v20  ;;  %3244 = vmatpush3.bf16.msra.mxu1 %v3638_v19 }
 0x239   :  { %3245 = vmatprep.subr.bf16.mxu1 %v3490_v20  ;;  %2985 = vmatprep.mubr.msk.f32.mxu1 %vm3491_vm5, %v3492_v40 }
 0x23b   :  { %3241 = vmatpush3.bf16.msra.mxu0 %v3753_v51 }
 0x23c   :  { %3248 = vmatprep.subr.bf16.mxu0 %v3490_v20  ;;  %3247 = vmatpush3.bf16.msra.mxu1 %v3674_v29 }
 0x23d   :  { %3254 = vmatprep.subr.bf16.mxu1 %v3490_v20 }
 0x23e   :  { %2975 = vmatmul.mubr.msk.f32.vlgmr.msra.gmra.mrb[22].mxu0 %vm85_vm0, %v947_v18 }
 0x23f   :  { %3250 = vmatpush3.bf16.msra.mxu0 %v3725_v41  ;;  %2996 = vmatprep.mubr.msk.f32.mxu0 %vm3491_vm5, %v3492_v40 }
 0x240   :  { %3251 = vmatprep.subr.bf16.mxu0 %v3490_v20 }
 0x243   :  { %3253 = vmatpush3.bf16.msra.mxu0 %v3741_v48 }
 0x244   :  { %3260 = vmatprep.subr.bf16.mxu0 %v3490_v20 }
 0x309   :  { %v1017_v32 = vpop.f32.mrb[20].mxu0  ;;  %v1087_v21 = vpop.f32.mrb[16].mxu1 }
 0x30a   :  { %v1161_v23 = vadd.f32 %v1017_v32, %v3799_v7  ;;  %v1168_v24 = vadd.f32 %v1087_v21, %v3793_v63  ;;  %v2954_v26 = vpop.f32.mrb[21].mxu0  ;;  %v2965_v30 = vpop.f32.mrb[17].mxu1 }
 0x30c   :  { %v2622_v31 = vmul.f32 -1.442695, %v1161_v23  ;;  %v2623_v28 = vmul.f32 -1.442695, %v1168_v24 }
 0x30e   :  { %3374 = vpow2.f32 %v2622_v31 }
 0x30f   :  { %3376 = vpow2.f32 %v2623_v28  ;;  %v1427_v28 = vpop.permute.xlu1 %1426 }
 0x310   :  { %vm1428_vm13 = vcmp.eq.s32.totalorder %v1427_v28, 1 }
 0x311   :  { %v1157_v33 = vpop.f32.mrb[22].mxu0 }
 0x312   :  { %v2976_v34 = vpop.f32.mrb[23].mxu0  ;;  %v1158_v42 = vadd.f32 %v3835_v1, %v1157_v33 }
 0x318   :  { %v3375_v35 = vpop.eup %3374 }
 0x319   :  { %v1165_v36 = vadd.f32 1.0, %v3375_v35  ;;  %v3377_v38 = vpop.eup %3376 }
 0x31a   :  { %v1172_v39 = vadd.f32 1.0, %v3377_v38 }
 0x31b   :  { %3378 = vrcp.f32 %v1165_v36 }
 0x31c   :  { %3380 = vrcp.f32 %v1172_v39 }
 0x325   :  { %v3379_v44 = vpop.eup %3378 }
 0x326   :  { %v1175_v7 = vmul.f32 %v3379_v44, %v1158_v42  ;;  %v3381_v45 = vpop.eup %3380 }
 0x327   :  { %v1178_v49 = vsub.f32 1.0, %v3381_v45  ;;  %v1180_v57 = vmul.f32 %v3381_v45, %v947_v18 }
 0x328   :  { %v1176_v63 = vadd.f32 %v1175_v7, %v3822_v43 }
 0x32a   :  { %3382 = vtanh.f32 %v1176_v63 }
 0x334   :  { %v3383_v53 = vpop.eup %3382 }
 0x335   :  { %v1179_v52 = vmul.f32 %v3383_v53, %v1178_v49 }
 0x337   :  { %v1181_v25 = vadd.f32 %v1180_v57, %v1179_v52 }
 0x339   :  { %v1188_v60 = vsel %vm1187_vm12, %v1181_v25, %v947_v18 }
 0x33a   :  { %2986 = vmatmul.mubr.msk.f32.vlgmr.msra.gmra.mrb[18].mxu1 %vm85_vm0, %v1188_v60  ;;  %2997 = vmatmul.mubr.msk.f32.vlgmr.msra.gmra.mrb[24].mxu0 %vm85_vm0, %v1188_v60 }
 0x33b   :  { %3256 = vmatpush3.bf16.msra.mxu1 %v3738_v47  ;;  %3007 = vmatprep.mubr.msk.f32.mxu1 %vm3491_vm5, %v3492_v40 }
 0x33c   :  { %3257 = vmatprep.subr.bf16.mxu1 %v3490_v20  ;;  %3262 = vmatpush3.bf16.msra.mxu0 %v3638_v19 }
 0x33d   :  { %3263 = vmatprep.subr.bf16.mxu0 %v3490_v20  ;;  %3018 = vmatprep.mubr.msk.f32.mxu0 %vm3491_vm5, %v3492_v40 }
 0x33f   :  { %3259 = vmatpush3.bf16.msra.mxu1 %v3753_v51 }
 0x340   :  { %3266 = vmatprep.subr.bf16.mxu1 %v3490_v20  ;;  %3265 = vmatpush3.bf16.msra.mxu0 %v3674_v29 }
 0x341   :  { %3272 = vmatprep.subr.bf16.mxu0 %v3490_v20 }
 0x342   :  { %3008 = vmatmul.mubr.msk.f32.vlgmr.msra.gmra.mrb[20].mxu1 %vm85_vm0, %v1188_v60 }
 0x343   :  { %3268 = vmatpush3.bf16.msra.mxu1 %v3725_v41  ;;  %3029 = vmatprep.mubr.msk.f32.mxu1 %vm3491_vm5, %v3492_v40 }
 0x344   :  { %3269 = vmatprep.subr.bf16.mxu1 %v3490_v20 }
 0x347   :  { %3271 = vmatpush3.bf16.msra.mxu1 %v3741_v48 }
 0x348   :  { %3278 = vmatprep.subr.bf16.mxu1 %v3490_v20 }
 0x40d   :  { %v1258_v43 = vpop.f32.mrb[18].mxu1  ;;  %v1328_v0 = vpop.f32.mrb[24].mxu0 }
 0x40e   :  { %v1402_v62 = vadd.f32 %v1258_v43, %v3795_v3  ;;  %v1409_v2 = vadd.f32 %v1328_v0, %v3791_v61  ;;  %v2987_v59 = vpop.f32.mrb[19].mxu1  ;;  %v2998_v54 = vpop.f32.mrb[25].mxu0 }
 0x40f   :  { %v1668_v59 = vpop.permute.xlu0 %1667 }
 0x410   :  { %v2627_v4 = vmul.f32 -1.442695, %v1402_v62  ;;  %v2628_v6 = vmul.f32 -1.442695, %v1409_v2  ;;  %vm1669_vm14 = vcmp.eq.s32.totalorder %v1668_v59, 1  ;;  %v2398_v59 = vld [vmem:[%s4079_s13] sm:$0xff] }
 0x412   :  { %3384 = vpow2.f32 %v2627_v4 }
 0x413   :  { %3386 = vpow2.f32 %v2628_v6 }
 0x415   :  { %v1398_v9 = vpop.f32.mrb[20].mxu1 }
 0x416   :  { %v3009_v10 = vpop.f32.mrb[21].mxu1  ;;  %v1399_v32 = vadd.f32 %v3835_v1, %v1398_v9 }
 0x41c   :  { %v3385_v12 = vpop.eup %3384 }
 0x41d   :  { %v1406_v14 = vadd.f32 1.0, %v3385_v12  ;;  %v3387_v17 = vpop.eup %3386 }
 0x41e   :  { %v1413_v18 = vadd.f32 1.0, %v3387_v17 }
 0x41f   :  { %3388 = vrcp.f32 %v1406_v14 }
 0x420   :  { %3390 = vrcp.f32 %v1413_v18 }
 0x429   :  { %v3389_v21 = vpop.eup %3388 }
 0x42a   :  { %v1416_v3 = vmul.f32 %v3389_v21, %v1399_v32  ;;  %v3391_v23 = vpop.eup %3390 }
 0x42b   :  { %v1419_v24 = vsub.f32 1.0, %v3391_v23  ;;  %v1421_v31 = vmul.f32 %v3391_v23, %v1188_v60 }
 0x42c   :  { %v1417_v61 = vadd.f32 %v1416_v3, %v3820_v37 }
 0x42e   :  { %3392 = vtanh.f32 %v1417_v61 }
 0x438   :  { %v3393_v26 = vpop.eup %3392 }
 0x439   :  { %v1420_v30 = vmul.f32 %v3393_v26, %v1419_v24 }
 0x43b   :  { %v1422_v33 = vadd.f32 %v1421_v31, %v1420_v30 }
 0x43d   :  { %v1429_v34 = vsel %vm1428_vm13, %v1422_v33, %v1188_v60 }
 0x43e   :  { %3019 = vmatmul.mubr.msk.f32.vlgmr.msra.gmra.mrb[26].mxu0 %vm85_vm0, %v1429_v34  ;;  %3030 = vmatmul.mubr.msk.f32.vlgmr.msra.gmra.mrb[22].mxu1 %vm85_vm0, %v1429_v34 }
 0x43f   :  { %3274 = vmatpush3.bf16.msra.mxu0 %v3738_v47  ;;  %3040 = vmatprep.mubr.msk.f32.mxu0 %vm3491_vm5, %v3492_v40 }
 0x440   :  { %3275 = vmatprep.subr.bf16.mxu0 %v3490_v20  ;;  %3280 = vmatpush3.bf16.msra.mxu1 %v3638_v19 }
 0x441   :  { %3281 = vmatprep.subr.bf16.mxu1 %v3490_v20  ;;  %3051 = vmatprep.mubr.msk.f32.mxu1 %vm3491_vm5, %v3492_v40 }
 0x443   :  { %3277 = vmatpush3.bf16.msra.mxu0 %v3753_v51 }
 0x444   :  { %3284 = vmatprep.subr.bf16.mxu0 %v3490_v20  ;;  %3283 = vmatpush3.bf16.msra.mxu1 %v3674_v29 }
 0x445   :  { %3290 = vmatprep.subr.bf16.mxu1 %v3490_v20 }
 0x446   :  { %3041 = vmatmul.mubr.msk.f32.vlgmr.msra.gmra.mrb[28].mxu0 %vm85_vm0, %v1429_v34 }
 0x447   :  { %3286 = vmatpush3.bf16.msra.mxu0 %v3725_v41  ;;  %3062 = vmatprep.mubr.msk.f32.mxu0 %vm3491_vm5, %v3492_v40 }
 0x448   :  { %3287 = vmatprep.subr.bf16.mxu0 %v3490_v20 }
 0x44b   :  { %3289 = vmatpush3.bf16.msra.mxu0 %v3741_v48 }
 0x44c   :  { %3296 = vmatprep.subr.bf16.mxu0 %v3490_v20 }
 0x511   :  { %v1499_v37 = vpop.f32.mrb[26].mxu0  ;;  %v1569_v35 = vpop.f32.mrb[22].mxu1 }
 0x512   :  { %v1643_v36 = vadd.f32 %v1499_v37, %v3807_v15  ;;  %v1650_v38 = vadd.f32 %v1569_v35, %v3801_v8  ;;  %v3020_v39 = vpop.f32.mrb[27].mxu0  ;;  %v3031_v42 = vpop.f32.mrb[23].mxu1 }
 0x513   :  { %v1909_v35 = vpop.permute.xlu1 %1908 }
 0x514   :  { %v2632_v44 = vmul.f32 -1.442695, %v1643_v36  ;;  %v2633_v7 = vmul.f32 -1.442695, %v1650_v38  ;;  %vm1910_vm15 = vcmp.eq.s32.totalorder %v1909_v35, 1 }
 0x516   :  { %3394 = vpow2.f32 %v2632_v44 }
 0x517   :  { %3396 = vpow2.f32 %v2633_v7  ;;  %v2391_v35 = vpop.permute.xlu1 %2390 }
 0x518   :  { %vm2392_vm2 = vcmp.eq.s32.totalorder %v2391_v35, 1 }
 0x519   :  { %v1639_v63 = vpop.f32.mrb[28].mxu0 }
 0x51a   :  { %v3042_v45 = vpop.f32.mrb[29].mxu0  ;;  %v1640_v57 = vadd.f32 %v3835_v1, %v1639_v63 }
 0x520   :  { %v3395_v49 = vpop.eup %3394 }
 0x521   :  { %v1647_v53 = vadd.f32 1.0, %v3395_v49  ;;  %v3397_v56 = vpop.eup %3396 }
 0x522   :  { %v1654_v52 = vadd.f32 1.0, %v3397_v56 }
 0x523   :  { %3398 = vrcp.f32 %v1647_v53 }
 0x524   :  { %3400 = vrcp.f32 %v1654_v52 }
 0x52d   :  { %v3399_v25 = vpop.eup %3398 }
 0x52e   :  { %v1657_v15 = vmul.f32 %v3399_v25, %v1640_v57  ;;  %v3401_v60 = vpop.eup %3400 }
 0x52f   :  { %v1660_v43 = vsub.f32 1.0, %v3401_v60  ;;  %v1662_v2 = vmul.f32 %v3401_v60, %v1429_v34  ;;  %v2150_v60 = vpop.permute.xlu0 %2149 }
 0x530   :  { %v1658_v8 = vadd.f32 %v1657_v15, %v3826_v50  ;;  %vm2151_vm1 = vcmp.eq.s32.totalorder %v2150_v60, 1 }
 0x532   :  { %3402 = vtanh.f32 %v1658_v8 }
 0x53c   :  { %v3403_v0 = vpop.eup %3402 }
 0x53d   :  { %v1661_v62 = vmul.f32 %v3403_v0, %v1660_v43 }
 0x53f   :  { %v1663_v54 = vadd.f32 %v1662_v2, %v1661_v62 }
 0x541   :  { %v1670_v4 = vsel %vm1669_vm14, %v1663_v54, %v1429_v34  ;;  %v2399_v54 = vld [vmem:[%s4079_s13 + $0x8] sm:$0xff] }
 0x542   :  { %3052 = vmatmul.mubr.msk.f32.vlgmr.msra.gmra.mrb[24].mxu1 %vm85_vm0, %v1670_v4  ;;  %3063 = vmatmul.mubr.msk.f32.vlgmr.msra.gmra.mrb[30].mxu0 %vm85_vm0, %v1670_v4 }
 0x543   :  { %3292 = vmatpush3.bf16.msra.mxu1 %v3738_v47  ;;  %3073 = vmatprep.mubr.msk.f32.mxu1 %vm3491_vm5, %v3492_v40 }
 0x544   :  { %3293 = vmatprep.subr.bf16.mxu1 %v3490_v20  ;;  %3298 = vmatpush3.bf16.msra.mxu0 %v3638_v19 }
 0x545   :  { %3299 = vmatprep.subr.bf16.mxu0 %v3490_v20  ;;  %3084 = vmatprep.mubr.msk.f32.mxu0 %vm3491_vm5, %v3492_v40 }
 0x547   :  { %3295 = vmatpush3.bf16.msra.mxu1 %v3753_v51 }
 0x548   :  { %3302 = vmatprep.subr.bf16.mxu1 %v3490_v20  ;;  %3301 = vmatpush3.bf16.msra.mxu0 %v3674_v29 }
 0x549   :  { %3308 = vmatprep.subr.bf16.mxu0 %v3490_v20 }
 0x54a   :  { %3074 = vmatmul.mubr.msk.f32.vlgmr.msra.gmra.mrb[26].mxu1 %vm85_vm0, %v1670_v4 }
 0x54b   :  { %3304 = vmatpush3.bf16.msra.mxu1 %v3725_v41  ;;  %3095 = vmatprep.mubr.msk.f32.mxu1 %vm3491_vm5, %v3492_v40 }
 0x54c   :  { %3305 = vmatprep.subr.bf16.mxu1 %v3490_v20 }
 0x54f   :  { %3307 = vmatpush3.bf16.msra.mxu1 %v3741_v48 }
 0x550   :  { %3314 = vmatprep.subr.bf16.mxu1 %v3490_v20 }
 0x615   :  { %v1740_v50 = vpop.f32.mrb[24].mxu1  ;;  %v1810_v6 = vpop.f32.mrb[30].mxu0 }
 0x616   :  { %v1884_v9 = vadd.f32 %v1740_v50, %v3803_v11  ;;  %v1891_v10 = vadd.f32 %v1810_v6, %v3797_v5  ;;  %v3053_v12 = vpop.f32.mrb[25].mxu1  ;;  %v3064_v14 = vpop.f32.mrb[31].mxu0  ;;  %v3333_v50 = vpack.c.bf16 %v2399_v54, %v2398_v59  ;;  %v2400_v6 = vld [vmem:[%s4079_s13 + $0x10] sm:$0xff] }
 0x618   :  { %v2637_v17 = vmul.f32 -1.442695, %v1884_v9  ;;  %v2638_v18 = vmul.f32 -1.442695, %v1891_v10  ;;  %v2401_v9 = vld [vmem:[%s4079_s13 + $0x18] sm:$0xff] }
 0x619   :  { %v3336_v12 = vpack.c.bf16 %v2401_v9, %v2400_v6 }
 0x61a   :  { %3404 = vpow2.f32 %v2637_v17 }
 0x61b   :  { %3406 = vpow2.f32 %v2638_v18 }
 0x61d   :  { %v1880_v32 = vpop.f32.mrb[26].mxu1 }
 0x61e   :  { %v3075_v21 = vpop.f32.mrb[27].mxu1  ;;  %v1881_v26 = vadd.f32 %v3835_v1, %v1880_v32 }
 0x624   :  { %v3405_v3 = vpop.eup %3404 }
 0x625   :  { %v1888_v61 = vadd.f32 1.0, %v3405_v3  ;;  %v3407_v23 = vpop.eup %3406 }
 0x626   :  { %v1895_v24 = vadd.f32 1.0, %v3407_v23 }
 0x627   :  { %3408 = vrcp.f32 %v1888_v61 }
 0x628   :  { %3410 = vrcp.f32 %v1895_v24 }
 0x631   :  { %v3409_v30 = vpop.eup %3408 }
 0x632   :  { %v1898_v11 = vmul.f32 %v3409_v30, %v1881_v26  ;;  %v3411_v31 = vpop.eup %3410 }
 0x633   :  { %v1901_v28 = vsub.f32 1.0, %v3411_v31  ;;  %v1903_v37 = vmul.f32 %v3411_v31, %v1670_v4 }
 0x634   :  { %v1899_v5 = vadd.f32 %v1898_v11, %v3824_v46 }
 0x636   :  { %3412 = vtanh.f32 %v1899_v5 }
 0x640   :  { %v3413_v33 = vpop.eup %3412 }
 0x641   :  { %v1902_v34 = vmul.f32 %v3413_v33, %v1901_v28 }
 0x643   :  { %v1904_v36 = vadd.f32 %v1903_v37, %v1902_v34 }
 0x645   :  { %v1911_v38 = vsel %vm1910_vm15, %v1904_v36, %v1670_v4  ;;  %v2397_v4 = vld [vmem:[%s4078_s12 + $0x18] sm:$0xff] }
 0x646   :  { %3085 = vmatmul.mubr.msk.f32.vlgmr.msra.gmra.mrb[32].mxu0 %vm85_vm0, %v1911_v38  ;;  %3096 = vmatmul.mubr.msk.f32.vlgmr.msra.gmra.mrb[28].mxu1 %vm85_vm0, %v1911_v38 }
 0x647   :  { %3310 = vmatpush3.bf16.msra.mxu0 %v3738_v47  ;;  %3106 = vmatprep.mubr.msk.f32.mxu0 %vm3491_vm5, %v3492_v40 }
 0x648   :  { %3311 = vmatprep.subr.bf16.mxu0 %v3490_v20  ;;  %3316 = vmatpush3.bf16.msra.mxu1 %v3638_v19 }
 0x649   :  { %3317 = vmatprep.subr.bf16.mxu1 %v3490_v20  ;;  %3117 = vmatprep.mubr.msk.f32.mxu1 %vm3491_vm5, %v3492_v40 }
 0x64b   :  { %3313 = vmatpush3.bf16.msra.mxu0 %v3753_v51 }
 0x64c   :  { %3320 = vmatprep.subr.bf16.mxu0 %v3490_v20  ;;  %3319 = vmatpush3.bf16.msra.mxu1 %v3674_v29 }
 0x64d   :  { %3326 = vmatprep.subr.bf16.mxu1 %v3490_v20 }
 0x64e   :  { %3107 = vmatmul.mubr.msk.f32.vlgmr.msra.gmra.mrb[34].mxu0 %vm85_vm0, %v1911_v38 }
 0x64f   :  { %3322 = vmatpush3.bf16.msra.mxu0 %v3725_v41  ;;  %3128 = vmatprep.mubr.msk.f32.mxu0 %vm3491_vm5, %v3492_v40 }
 0x650   :  { %3323 = vmatprep.subr.bf16.mxu0 %v3490_v20 }
 0x653   :  { %3325 = vmatpush3.bf16.msra.mxu0 %v3741_v48 }
 0x654   :  { %3332 = vmatprep.subr.bf16.mxu0 %v3490_v20 }
 0x719   :  { %v1981_v19 = vpop.f32.mrb[32].mxu0  ;;  %v2051_v46 = vpop.f32.mrb[28].mxu1 }
 0x71a   :  { %v2125_v39 = vadd.f32 %v1981_v19, %v3813_v27  ;;  %v2132_v29 = vadd.f32 %v2051_v46, %v3809_v16  ;;  %v3086_v42 = vpop.f32.mrb[33].mxu0  ;;  %v3097_v44 = vpop.f32.mrb[29].mxu1 }
 0x71c   :  { %v2642_v7 = vmul.f32 -1.442695, %v2125_v39  ;;  %v2643_v41 = vmul.f32 -1.442695, %v2132_v29 }
 0x71e   :  { %3414 = vpow2.f32 %v2642_v7 }
 0x71f   :  { %3416 = vpow2.f32 %v2643_v41 }
 0x721   :  { %v2121_v63 = vpop.f32.mrb[34].mxu0 }
 0x722   :  { %v3108_v45 = vpop.f32.mrb[35].mxu0  ;;  %v2122_v52 = vadd.f32 %v3835_v1, %v2121_v63 }
 0x728   :  { %v3415_v49 = vpop.eup %3414 }
 0x729   :  { %v2129_v53 = vadd.f32 1.0, %v3415_v49  ;;  %v3417_v48 = vpop.eup %3416 }
 0x72a   :  { %v2136_v56 = vadd.f32 1.0, %v3417_v48 }
 0x72b   :  { %3418 = vrcp.f32 %v2129_v53 }
 0x72c   :  { %3420 = vrcp.f32 %v2136_v56 }
 0x735   :  { %v3419_v57 = vpop.eup %3418 }
 0x736   :  { %v2139_v27 = vmul.f32 %v3419_v57, %v2122_v52  ;;  %v3421_v25 = vpop.eup %3420 }
 0x737   :  { %v2142_v15 = vsub.f32 1.0, %v3421_v25  ;;  %v2144_v0 = vmul.f32 %v3421_v25, %v1911_v38 }
 0x738   :  { %v2140_v16 = vadd.f32 %v2139_v27, %v3830_v58  ;;  %v2395_v58 = vld [vmem:[%s4078_s12 + $0x8] sm:$0xff] }
 0x73a   :  { %3422 = vtanh.f32 %v2140_v16 }
 0x744   :  { %v3423_v8 = vpop.eup %3422 }
 0x745   :  { %v2143_v43 = vmul.f32 %v3423_v8, %v2142_v15 }
 0x747   :  { %v2145_v62 = vadd.f32 %v2144_v0, %v2143_v43 }
 0x749   :  { %v2152_v2 = vsel %vm2151_vm1, %v2145_v62, %v1911_v38 }
 0x74a   :  { %3118 = vmatmul.mubr.msk.f32.vlgmr.msra.gmra.mrb[30].mxu1 %vm85_vm0, %v2152_v2  ;;  %3129 = vmatmul.mubr.msk.f32.vlgmr.msra.gmra.mrb[36].mxu0 %vm85_vm0, %v2152_v2 }
 0x74b   :  { %3328 = vmatpush3.bf16.msra.mxu1 %v3738_v47  ;;  %3139 = vmatprep.mubr.msk.f32.mxu1 %vm3491_vm5, %v3492_v40  ;;  %v2394_v47 = vld [vmem:[%s4078_s12] sm:$0xff] }
 0x74c   :  { %3329 = vmatprep.subr.bf16.mxu1 %v3490_v20  ;;  %3150 = vmatprep.mubr.msk.f32.mxu0 %vm3491_vm5, %v3492_v40 }
 0x74d   :  { %3334 = vmatpush3.bf16.msra.mxu0 %v3333_v50 }
 0x74e   :  { %3335 = vmatprep.subr.bf16.mxu0 %v3490_v20 }
 0x74f   :  { %3331 = vmatpush3.bf16.msra.mxu1 %v3753_v51  ;;  %v3339_v51 = vpack.c.bf16 %v2395_v58, %v2394_v47 }
 0x750   :  { %3338 = vmatprep.subr.bf16.mxu1 %v3490_v20 }
 0x751   :  { %3337 = vmatpush3.bf16.msra.mxu0 %v3336_v12 }
 0x752   :  { %3140 = vmatmul.mubr.msk.f32.vlgmr.msra.gmra.mrb[32].mxu1 %vm85_vm0, %v2152_v2 }
 0x753   :  { %3161 = vmatprep.mubr.msk.f32.mxu1 %vm3491_vm5, %v3492_v40  ;;  %v2396_v40 = vld [vmem:[%s4078_s12 + $0x10] sm:$0xff]  ;;  %3340 = vmatpush3.bf16.msra.mxu1 %v3339_v51 }
 0x754   :  { %v3342_v10 = vpack.c.bf16 %v2397_v4, %v2396_v40  ;;  %3341 = vmatprep.subr.bf16.mxu1 %v3490_v20 }
 0x757   :  { %3343 = vmatpush3.bf16.msra.mxu1 %v3342_v10 }
 0x81d   :  { %v2222_v14 = vpop.f32.mrb[30].mxu1  ;;  %v2292_v17 = vpop.f32.mrb[36].mxu0 }
 0x81e   :  { %v2366_v18 = vadd.f32 %v2222_v14, %v3811_v22  ;;  %v2373_v32 = vadd.f32 %v2292_v17, %v3805_v13  ;;  %v3119_v21 = vpop.f32.mrb[31].mxu1  ;;  %v3130_v3 = vpop.f32.mrb[37].mxu0 }
 0x820   :  { %v2647_v61 = vmul.f32 -1.442695, %v2366_v18  ;;  %v2648_v23 = vmul.f32 -1.442695, %v2373_v32 }
 0x822   :  { %3424 = vpow2.f32 %v2647_v61 }
 0x823   :  { %3426 = vpow2.f32 %v2648_v23 }
 0x825   :  { %v2362_v24 = vpop.f32.mrb[32].mxu1 }
 0x826   :  { %v3141_v26 = vpop.f32.mrb[33].mxu1  ;;  %v2363_v31 = vadd.f32 %v3835_v1, %v2362_v24 }
 0x82c   :  { %v3425_v30 = vpop.eup %3424 }
 0x82d   :  { %v2370_v11 = vadd.f32 1.0, %v3425_v30  ;;  %v3427_v20 = vpop.eup %3426 }
 0x82e   :  { %v2377_v5 = vadd.f32 1.0, %v3427_v20 }
 0x82f   :  { %3428 = vrcp.f32 %v2370_v11 }
 0x830   :  { %3430 = vrcp.f32 %v2377_v5 }
 0x839   :  { %v3429_v28 = vpop.eup %3428 }
 0x83a   :  { %v2380_v22 = vmul.f32 %v3429_v28, %v2363_v31  ;;  %v3431_v33 = vpop.eup %3430 }
 0x83b   :  { %v2383_v34 = vsub.f32 1.0, %v3431_v33  ;;  %v2385_v38 = vmul.f32 %v3431_v33, %v2152_v2 }
 0x83c   :  { %v2381_v13 = vadd.f32 %v2380_v22, %v3828_v55  ;;  %v2651_v55 = vld [vmem:[%s4080_s14] ss:$0 sm:$0xff]  ;;  %s3460_s14 = scalar_lea.vmem %s2576_s16, 32 }
 0x83d   :  { %p3461_p8 = scmp.ne.s32.totalorder %s2576_s16, %s3460_s14  ;;  %p3466_p10 = scmp.lt.s32.totalorder %s3460_s14, %s3460_s14 }
 0x83e   :  { %3432 = vtanh.f32 %v2381_v13 }
 0x83f   :  { %p3467_p11 = por %p3466_p10, %p3465_p9 }
 0x841   :  { %p3468_p12 = pnand %p3467_p11, %p3461_p8 }
 0x848   :  { %v3433_v37 = vpop.eup %3432 }
 0x849   :  { %v2384_v36 = vmul.f32 %v3433_v37, %v2383_v34 }
 0x84b   :  { %v2386_v19 = vadd.f32 %v2385_v38, %v2384_v36 }
 0x84d   :  { %v2393_v46 = vsel %vm2392_vm2, %v2386_v19, %v2152_v2 }
 0x84e   :  { %v2403_v39 = vrot.slane %v2393_v46, 2  ;;  %3162 = vmatmul.mubr.msk.f32.vlgmr.msra.gmra.mrb[34].mxu1 %vm85_vm0, %v2393_v46 }
 0x850   :  { %3151 = vmatmul.mubr.msk.f32.vlgmr.msra.gmra.mrb[38].mxu0 %vm85_vm0, %v2403_v39 }
 0x921   :  { %v2544_v1 = vpop.f32.mrb[34].mxu1 }
 0x922   :  { %v3163_v29 = vpop.f32.mrb[35].mxu1 }
 0x923   :  { %v2472_v42 = vpop.f32.mrb[38].mxu0 }
 0x924   :  { %v2545_v44 = vadd.f32 %v2544_v1, %v2472_v42  ;;  %v3152_v7 = vpop.f32.mrb[39].mxu0 }
 0x926   :  { %v2555_v41 = vadd.f32 %v2651_v55, %v2545_v44 }
 0x928   :  { %v2557_v63 = vsel %vm2556_vm3, %v2555_v41, -inf }
 0x929   :  { %2558 = vmax.xlane.f32.xlu0 %v2557_v63 }
 0x9b6   :  { %v2559_v45 = vpop.xlane.xlu0 %2558 }
 0x9b7   :  { %v2560_v49 = vsub.f32 %v2555_v41, %v2559_v45 }
 0x9b9   :  { %v2561_v53 = vmul.f32 1.442695, %v2560_v49 }
 0x9bb   :  { %3434 = vpow2.f32 %v2561_v53 }
 0x9c5   :  { %v3435_v48 = vpop.eup %3434 }
 0x9c6   :  { %v2563_v56 = vsel %vm2556_vm3, %v3435_v48, 0.0 }
 0x9c7   :  { %2564 = vadd.xlane.f32.xlu1 %v2563_v56 }
 0xa54   :  { %v2565_v52 = vpop.xlane.xlu1 %2564 }
 0xa55   :  { %3436 = vrcp.f32 %v2565_v52 }
 0xa5f   :  { %v3437_v57 = vpop.eup %3436 }
 0xa60   :  { %v2567_v27 = vmul.f32 %v3437_v57, %v3435_v48 }
 0xa62   :  { %2568 = vst.msk [vmem:[#allocation5] sm:$0x3] %vm2556_vm3, %v2567_v27 }
 0xa63   :  { %3471 = shalt.err (!%p3468_p12)
}
 0xa64   :  { %s3472_s18 = scalar_lea.hbm %s4081_s15, 32 }
 0xa65   :  { %p3473_p13 = scmp.ne.s32.totalorder %s4081_s15, %s3472_s18  ;;  %p3476_p0 = scmp.lt.u32.totalorder %s3472_s18, %s4081_s15 }
 0xa67   :  { %p3478_p1 = pnand %p3476_p0, %p3473_p13 }
 0xa69   :  { %3481 = shalt.err (!%p3478_p1)
}
 0xa6a   :  { %2578 = dma.vmem_to_hbm [thread:$0]  %s2576_s16, 32, %s4081_s15, [#allocation4]  }
 0xa6b   :  { %3484 = dma.done.wait [#allocation4], 32  }
 0xa6c   :  { %3485 = vsyncadd [#allocation4], 4294967264 }
 0xa6d   :  { %2582 = vsyncpa [#allocation3], 1 }
 0xa6e   :  { %2583 = vsyncpa [#allocation4], 1 }

</bundles_post_ra>
